<compile_context>
chip_gen: v7x
topology: tpu7x:2x2x1
jax: 0.10.0
libtpu: 0.0.40
codegen_flags: <defaults>
</compile_context>

<pallas_src>
import numpy as np

import jax
import jax.numpy as jnp
from jax.experimental import pallas as pl
from jax.experimental.pallas import tpu as pltpu


# ---------------------------------------------------------------------------
# Host-side, one-time weight repacking (zero per-call cost)
# ---------------------------------------------------------------------------
def _toeplitz_slabs(w, w_in):
    """Conv weight (Cout, Cin, KH, KW) -> (KH, w_in*Cin, w_out*Cout) Toeplitz slabs.

    With activations laid out as A[h, w*Cin + ci] (channel fastest), a valid
    stride-1 cross-correlation is  out = sum_ki  A[ki:ki+h_out, :] @ slab[ki],
    giving out[h, w*Cout + co] = conv(h, w, co)  (PyTorch Conv2d semantics).
    """
    cout, cin, kh, kw = w.shape
    w_out = w_in - kw + 1
    t = np.zeros((kh, w_in * cin, w_out * cout), np.float32)
    for ki in range(kh):
        for kj in range(kw):
            blk = np.asarray(w[:, :, ki, kj], np.float32).T          # (Cin, Cout)
            for wo in range(w_out):
                t[ki, (wo + kj) * cin:(wo + kj + 1) * cin,
                      wo * cout:(wo + 1) * cout] = blk
    return t


def _even_row_selector(n_pairs, n_rows):
    """(n_pairs, n_rows) 0/1 matrix selecting rows 0, 2, 4, ... via an exact matmul."""
    s = np.zeros((n_pairs, n_rows), np.float32)
    s[np.arange(n_pairs), 2 * np.arange(n_pairs)] = 1.0
    return s


def _col_group_selector(n_in, n_groups_out, group, offset):
    """(n_in, n_groups_out*group) 0/1 matrix: out col w*group+c <- in col (2w+offset)*group+c."""
    n_out = n_groups_out * group
    p = np.zeros((n_in, n_out), np.float32)
    j = np.arange(n_out)
    p[(2 * (j // group) + offset) * group + (j % group), j] = 1.0
    return p


def prepare_params(params):
    """Repack PyTorch-layout params into kernel layouts.  Run once, outside jit."""
    w1 = np.asarray(params["conv1_w"], np.float32)     # (6, 1, 5, 5)
    b1 = np.asarray(params["conv1_b"], np.float32)
    w2 = np.asarray(params["conv2_w"], np.float32)     # (16, 6, 5, 5)
    b2 = np.asarray(params["conv2_b"], np.float32)
    fw1 = np.asarray(params["fc1_w"], np.float32)      # (120, 256)
    fb1 = np.asarray(params["fc1_b"], np.float32)
    fw2 = np.asarray(params["fc2_w"], np.float32)      # (84, 120)
    fb2 = np.asarray(params["fc2_b"], np.float32)
    fw3 = np.asarray(params["fc3_w"], np.float32)      # (10, 84)
    fb3 = np.asarray(params["fc3_b"], np.float32)

    prep = {
        # conv1: 28 -> 24, Cin=1, Cout=6
        "t1":  _toeplitz_slabs(w1, 28),                # (5, 28, 144)
        "b1":  np.tile(b1, 24)[None, :],               # (1, 144)  b1[w*6+c] = conv1_b[c]
        "s1":  _even_row_selector(12, 23),             # (12, 23)
        "p1e": _col_group_selector(144, 12, 6, 0),     # (144, 72)
        "p1o": _col_group_selector(144, 12, 6, 1),     # (144, 72)
        # conv2: 12 -> 8, Cin=6, Cout=16
        "t2":  _toeplitz_slabs(w2, 12),                # (5, 72, 128)
        "b2":  np.tile(b2, 8)[None, :],                # (1, 128)
        "s2":  _even_row_selector(4, 7),               # (4, 7)
        "p2e": _col_group_selector(128, 4, 16, 0),     # (128, 64)
        "p2o": _col_group_selector(128, 4, 16, 1),     # (128, 64)
        # fc1: columns permuted once from PyTorch's (c, h, w) flatten order to the
        # kernel's (h, w, c) order -> no runtime transposes of the feature map.
        "fw1": fw1.reshape(120, 16, 4, 4).transpose(2, 3, 1, 0).reshape(256, 120),
        "fb1": fb1[None, :],                           # (1, 120)
        "fw2": fw2.T,                                  # (120, 84)
        "fb2": fb2[None, :],                           # (1, 84)
        "fw3": fw3.T,                                  # (84, 10)
        "fb3": fb3[None, :],                           # (1, 10)
    }
    return {k: jnp.asarray(v) for k, v in prep.items()}


# ---------------------------------------------------------------------------
# Fused Pallas kernel: whole LeNet forward for one image per grid step
# ---------------------------------------------------------------------------
def _lenet_kernel(x_ref, t1_ref, b1_ref, s1_ref, p1e_ref, p1o_ref,
                  t2_ref, b2_ref, s2_ref, p2e_ref, p2o_ref,
                  fw1_ref, fb1_ref, fw2_ref, fb2_ref, fw3_ref, fb3_ref,
                  o_ref):
    f32 = jnp.float32

    # ---- conv1 + ReLU : activations laid out (H, W*C), C fastest -------------
    x = x_ref[0]                                                    # (28, 28)
    acc = jnp.zeros((24, 144), f32)
    for ki in range(5):                                             # static unroll: 5 MXU matmuls
        acc += jnp.dot(x[ki:ki + 24, :], t1_ref[ki], preferred_element_type=f32)
    h = jnp.maximum(acc + b1_ref[...], 0.0)                         # (24, 144) = (24, 24*6)

    # ---- maxpool 2x2 : row-pair max (VPU) + exact 0/1 selection matmuls (MXU) -
    m = jnp.maximum(h[:-1, :], h[1:, :])                            # (23, 144)
    m = jnp.dot(s1_ref[...], m, preferred_element_type=f32)         # (12, 144) keep rows 0,2,...
    h = jnp.maximum(jnp.dot(m, p1e_ref[...], preferred_element_type=f32),
                    jnp.dot(m, p1o_ref[...], preferred_element_type=f32))   # (12, 72)

    # ---- conv2 + ReLU ---------------------------------------------------------
    acc = jnp.zeros((8, 128), f32)
    for ki in range(5):
        acc += jnp.dot(h[ki:ki + 8, :], t2_ref[ki], preferred_element_type=f32)
    h = jnp.maximum(acc + b2_ref[...], 0.0)                         # (8, 128) = (8, 8*16)

    # ---- maxpool 2x2 ----------------------------------------------------------
    m = jnp.maximum(h[:-1, :], h[1:, :])                            # (7, 128)
    m = jnp.dot(s2_ref[...], m, preferred_element_type=f32)         # (4, 128)
    h = jnp.maximum(jnp.dot(m, p2e_ref[...], preferred_element_type=f32),
                    jnp.dot(m, p2o_ref[...], preferred_element_type=f32))   # (4, 64)

    # ---- fc1 + ReLU : contract the (h, w, c) features row-by-row --------------
    # (avoids a lane-crossing (4,64)->(1,256) reshape; fw1 rows are pre-ordered)
    acc = jnp.zeros((1, 120), f32)
    for r in range(4):
        acc += jnp.dot(h[r:r + 1, :], fw1_ref[r * 64:(r + 1) * 64, :],
                       preferred_element_type=f32)
    z = jnp.maximum(acc + fb1_ref[...], 0.0)                        # (1, 120)

    # ---- fc2 + ReLU, fc3 ------------------------------------------------------
    z = jnp.maximum(jnp.dot(z, fw2_ref[...], preferred_element_type=f32) + fb2_ref[...], 0.0)
    z = jnp.dot(z, fw3_ref[...], preferred_element_type=f32) + fb3_ref[...]
    o_ref[0] = z                                                    # (1, 10)


@jax.jit
def net_forward(prep, x):
    """x: (B, 1, 28, 28) NCHW like the PyTorch module.  Returns (B, 10) logits."""
    B = x.shape[0]
    assert x.shape[1:] == (1, 28, 28), x.shape
    x2 = x.reshape(B, 28, 28).astype(jnp.float32)                   # drop the unit channel dim

    flops = 2_500_000 * B                                           # ~2 * MACs of the fused forward
    bytes_accessed = (x2.size + B * 10 + sum(int(v.size) for v in prep.values())) * 4

    out = pl.pallas_call(
        _lenet_kernel,
        out_shape=jax.ShapeDtypeStruct((B, 1, 10), jnp.float32),
        grid=(B,),
        in_specs=[
            pl.BlockSpec((1, 28, 28), lambda i: (i, 0, 0)),     # one image per grid step
            pl.BlockSpec((5, 28, 144), lambda i: (0, 0, 0)),    # conv1 Toeplitz slabs
            pl.BlockSpec((1, 144), lambda i: (0, 0)),           # conv1 bias (tiled over W)
            pl.BlockSpec((12, 23), lambda i: (0, 0)),           # pool1 row selector
            pl.BlockSpec((144, 72), lambda i: (0, 0)),          # pool1 even-col selector
            pl.BlockSpec((144, 72), lambda i: (0, 0)),          # pool1 odd-col selector
            pl.BlockSpec((5, 72, 128), lambda i: (0, 0, 0)),    # conv2 Toeplitz slabs
            pl.BlockSpec((1, 128), lambda i: (0, 0)),           # conv2 bias
            pl.BlockSpec((4, 7), lambda i: (0, 0)),             # pool2 row selector
            pl.BlockSpec((128, 64), lambda i: (0, 0)),          # pool2 even-col selector
            pl.BlockSpec((128, 64), lambda i: (0, 0)),          # pool2 odd-col selector
            pl.BlockSpec((256, 120), lambda i: (0, 0)),         # fc1 weight (permuted columns)
            pl.BlockSpec((1, 120), lambda i: (0, 0)),           # fc1 bias
            pl.BlockSpec((120, 84), lambda i: (0, 0)),          # fc2 weight
            pl.BlockSpec((1, 84), lambda i: (0, 0)),            # fc2 bias
            pl.BlockSpec((84, 10), lambda i: (0, 0)),           # fc3 weight
            pl.BlockSpec((1, 10), lambda i: (0, 0)),            # fc3 bias
        ],
        out_specs=pl.BlockSpec((1, 1, 10), lambda i: (i, 0, 0)),
        compiler_params=pltpu.CompilerParams(
            dimension_semantics=("parallel",)),                 # megacore-shards the batch axis
        cost_estimate=pl.CostEstimate(flops=flops, transcendentals=0,
                                      bytes_accessed=bytes_accessed),
    )(x2, prep["t1"], prep["b1"], prep["s1"], prep["p1e"], prep["p1o"],
      prep["t2"], prep["b2"], prep["s2"], prep["p2e"], prep["p2o"],
      prep["fw1"], prep["fb1"], prep["fw2"], prep["fb2"], prep["fw3"], prep["fb3"])
    return out.reshape(B, 10)


# ---------------------------------------------------------------------------
# Parameters (PyTorch-style init) + pure-JAX reference for self-checking
# ---------------------------------------------------------------------------
def init_params(key):
    """Deterministic init mimicking PyTorch's U(-1/sqrt(fan_in), 1/sqrt(fan_in))."""
    ks = jax.random.split(key, 10)

    def u(k, shape, fan_in):
        bound = 1.0 / float(fan_in) ** 0.5
        return jax.random.uniform(k, shape, jnp.float32, -bound, bound)

    return {
        "conv1_w": u(ks[0], (6, 1, 5, 5), 1 * 25),
        "conv1_b": u(ks[1], (6,), 1 * 25),
        "conv2_w": u(ks[2], (16, 6, 5, 5), 6 * 25),
        "conv2_b": u(ks[3], (16,), 6 * 25),
        "fc1_w": u(ks[4], (120, 16 * 4 * 4), 16 * 4 * 4),
        "fc1_b": u(ks[5], (120,), 16 * 4 * 4),
        "fc2_w": u(ks[6], (84, 120), 120),
        "fc2_b": u(ks[7], (84,), 120),
        "fc3_w": u(ks[8], (10, 84), 84),
        "fc3_b": u(ks[9], (10,), 84),
    }


def _reference_forward(params, x):
    """Pure-JAX (XLA) reference matching the PyTorch module, used as a self-check."""
    dn = ("NCHW", "OIHW", "NCHW")
    y = jax.lax.conv_general_dilated(x, params["conv1_w"], (1, 1), "VALID",
                                     dimension_numbers=dn)
    y = jax.nn.relu(y + params["conv1_b"][None, :, None, None])
    y = jax.lax.reduce_window(y, -jnp.inf, jax.lax.max, (1, 1, 2, 2), (1, 1, 2, 2), "VALID")
    y = jax.lax.conv_general_dilated(y, params["conv2_w"], (1, 1), "VALID",
                                     dimension_numbers=dn)
    y = jax.nn.relu(y + params["conv2_b"][None, :, None, None])
    y = jax.lax.reduce_window(y, -jnp.inf, jax.lax.max, (1, 1, 2, 2), (1, 1, 2, 2), "VALID")
    y = y.reshape(y.shape[0], -1)                       # NCHW flatten = PyTorch .view order
    y = jax.nn.relu(y @ params["fc1_w"].T + params["fc1_b"])
    y = jax.nn.relu(y @ params["fc2_w"].T + params["fc2_b"])
    return y @ params["fc3_w"].T + params["fc3_b"]


if __name__ == "__main__":
    key = jax.random.PRNGKey(0)
    pkey, xkey = jax.random.split(key)
    params = init_params(pkey)
    prep = prepare_params(params)                       # one-time host repack

    # LeNet geometry requires 28x28 single-channel input: 28 -> 24 -> 12 -> 8 -> 4.
    x = jax.random.normal(xkey, (2, 1, 28, 28), dtype=jnp.float32)

    out = jax.block_until_ready(net_forward(prep, x))
    assert out.shape == (2, 10), out.shape
    assert bool(jnp.all(jnp.isfinite(out)))

    ref = jax.block_until_ready(_reference_forward(params, x))
    np.testing.assert_allclose(np.asarray(out), np.asarray(ref), rtol=5e-3, atol=5e-3)

    print("KERNEL_OK")
</pallas_src>

<mosaic_0001>
module attributes {stable_mosaic.version = 11 : i64} {
  func.func @_lenet_kernel(%arg0: i32, %arg1: memref<1x28x28xf32, #tpu.memory_space<vmem>>, %arg2: memref<5x28x144xf32, #tpu.memory_space<vmem>>, %arg3: memref<1x144xf32, #tpu.memory_space<vmem>>, %arg4: memref<12x23xf32, #tpu.memory_space<vmem>>, %arg5: memref<144x72xf32, #tpu.memory_space<vmem>>, %arg6: memref<144x72xf32, #tpu.memory_space<vmem>>, %arg7: memref<5x72x128xf32, #tpu.memory_space<vmem>>, %arg8: memref<1x128xf32, #tpu.memory_space<vmem>>, %arg9: memref<4x7xf32, #tpu.memory_space<vmem>>, %arg10: memref<128x64xf32, #tpu.memory_space<vmem>>, %arg11: memref<128x64xf32, #tpu.memory_space<vmem>>, %arg12: memref<256x120xf32, #tpu.memory_space<vmem>>, %arg13: memref<1x120xf32, #tpu.memory_space<vmem>>, %arg14: memref<120x84xf32, #tpu.memory_space<vmem>>, %arg15: memref<1x84xf32, #tpu.memory_space<vmem>>, %arg16: memref<84x10xf32, #tpu.memory_space<vmem>>, %arg17: memref<1x10xf32, #tpu.memory_space<vmem>>, %arg18: memref<1x1x10xf32, #tpu.memory_space<vmem>>) attributes {dimension_semantics = [#tpu.dimension_semantics<parallel>], iteration_bounds = array<i64: 2>, scalar_prefetch = 0 : i64, scratch_operands = 0 : i64, tpu.core_type = #tpu.core_type<tc>, window_params = [{transform_indices = @transform_0, window_bounds = array<i64: 1, 28, 28>}, {pipeline_mode = #tpu.pipeline_mode<synchronous>, transform_indices = @transform_1, window_bounds = array<i64: 5, 28, 144>}, {pipeline_mode = #tpu.pipeline_mode<synchronous>, transform_indices = @transform_2, window_bounds = array<i64: 1, 144>}, {pipeline_mode = #tpu.pipeline_mode<synchronous>, transform_indices = @transform_3, window_bounds = array<i64: 12, 23>}, {pipeline_mode = #tpu.pipeline_mode<synchronous>, transform_indices = @transform_4, window_bounds = array<i64: 144, 72>}, {pipeline_mode = #tpu.pipeline_mode<synchronous>, transform_indices = @transform_5, window_bounds = array<i64: 144, 72>}, {pipeline_mode = #tpu.pipeline_mode<synchronous>, transform_indices = @transform_6, window_bounds = array<i64: 5, 72, 128>}, {pipeline_mode = #tpu.pipeline_mode<synchronous>, transform_indices = @transform_7, window_bounds = array<i64: 1, 128>}, {pipeline_mode = #tpu.pipeline_mode<synchronous>, transform_indices = @transform_8, window_bounds = array<i64: 4, 7>}, {pipeline_mode = #tpu.pipeline_mode<synchronous>, transform_indices = @transform_9, window_bounds = array<i64: 128, 64>}, {pipeline_mode = #tpu.pipeline_mode<synchronous>, transform_indices = @transform_10, window_bounds = array<i64: 128, 64>}, {pipeline_mode = #tpu.pipeline_mode<synchronous>, transform_indices = @transform_11, window_bounds = array<i64: 256, 120>}, {pipeline_mode = #tpu.pipeline_mode<synchronous>, transform_indices = @transform_12, window_bounds = array<i64: 1, 120>}, {pipeline_mode = #tpu.pipeline_mode<synchronous>, transform_indices = @transform_13, window_bounds = array<i64: 120, 84>}, {pipeline_mode = #tpu.pipeline_mode<synchronous>, transform_indices = @transform_14, window_bounds = array<i64: 1, 84>}, {pipeline_mode = #tpu.pipeline_mode<synchronous>, transform_indices = @transform_15, window_bounds = array<i64: 84, 10>}, {pipeline_mode = #tpu.pipeline_mode<synchronous>, transform_indices = @transform_16, window_bounds = array<i64: 1, 10>}, {transform_indices = @transform_17, window_bounds = array<i64: 1, 1, 10>}]} {
    %c0 = arith.constant 0 : index
    %c0_0 = arith.constant 0 : index
    %c0_1 = arith.constant 0 : index
    %0 = vector.load %arg1[%c0, %c0_0, %c0_1] : memref<1x28x28xf32, #tpu.memory_space<vmem>>, vector<1x28x28xf32>
    %1 = vector.shape_cast %0 : vector<1x28x28xf32> to vector<28x28xf32>
    %cst = arith.constant 0.000000e+00 : f32
    %2 = vector.broadcast %cst : f32 to vector<24x144xf32>
    %3 = vector.extract_strided_slice %1 {offsets = [0, 0], sizes = [24, 28], strides = [1, 1]} : vector<28x28xf32> to vector<24x28xf32>
    %c0_2 = arith.constant 0 : index
    %c0_3 = arith.constant 0 : index
    %c0_4 = arith.constant 0 : index
    %4 = vector.load %arg2[%c0_2, %c0_3, %c0_4] : memref<5x28x144xf32, #tpu.memory_space<vmem>>, vector<1x28x144xf32>
    %5 = vector.shape_cast %4 : vector<1x28x144xf32> to vector<28x144xf32>
    %cst_5 = arith.constant dense<0.000000e+00> : vector<24x144xf32>
    %6 = tpu.matmul %3, %5, %cst_5 {dimension_numbers = #tpu.dot_dimension_numbers<[1], [0], [0], [1], [0, 0, 1, 1], [], []>} : vector<24x28xf32>, vector<28x144xf32>, vector<24x144xf32> -> vector<24x144xf32>
    %7 = arith.addf %2, %6 : vector<24x144xf32>
    %8 = vector.extract_strided_slice %1 {offsets = [1, 0], sizes = [24, 28], strides = [1, 1]} : vector<28x28xf32> to vector<24x28xf32>
    %c1 = arith.constant 1 : index
    %c0_6 = arith.constant 0 : index
    %c0_7 = arith.constant 0 : index
    %9 = vector.load %arg2[%c1, %c0_6, %c0_7] : memref<5x28x144xf32, #tpu.memory_space<vmem>>, vector<1x28x144xf32>
    %10 = vector.shape_cast %9 : vector<1x28x144xf32> to vector<28x144xf32>
    %cst_8 = arith.constant dense<0.000000e+00> : vector<24x144xf32>
    %11 = tpu.matmul %8, %10, %cst_8 {dimension_numbers = #tpu.dot_dimension_numbers<[1], [0], [0], [1], [0, 0, 1, 1], [], []>} : vector<24x28xf32>, vector<28x144xf32>, vector<24x144xf32> -> vector<24x144xf32>
    %12 = arith.addf %7, %11 : vector<24x144xf32>
    %13 = vector.extract_strided_slice %1 {offsets = [2, 0], sizes = [24, 28], strides = [1, 1]} : vector<28x28xf32> to vector<24x28xf32>
    %c2 = arith.constant 2 : index
    %c0_9 = arith.constant 0 : index
    %c0_10 = arith.constant 0 : index
    %14 = vector.load %arg2[%c2, %c0_9, %c0_10] : memref<5x28x144xf32, #tpu.memory_space<vmem>>, vector<1x28x144xf32>
    %15 = vector.shape_cast %14 : vector<1x28x144xf32> to vector<28x144xf32>
    %cst_11 = arith.constant dense<0.000000e+00> : vector<24x144xf32>
    %16 = tpu.matmul %13, %15, %cst_11 {dimension_numbers = #tpu.dot_dimension_numbers<[1], [0], [0], [1], [0, 0, 1, 1], [], []>} : vector<24x28xf32>, vector<28x144xf32>, vector<24x144xf32> -> vector<24x144xf32>
    %17 = arith.addf %12, %16 : vector<24x144xf32>
    %18 = vector.extract_strided_slice %1 {offsets = [3, 0], sizes = [24, 28], strides = [1, 1]} : vector<28x28xf32> to vector<24x28xf32>
    %c3 = arith.constant 3 : index
    %c0_12 = arith.constant 0 : index
    %c0_13 = arith.constant 0 : index
    %19 = vector.load %arg2[%c3, %c0_12, %c0_13] : memref<5x28x144xf32, #tpu.memory_space<vmem>>, vector<1x28x144xf32>
    %20 = vector.shape_cast %19 : vector<1x28x144xf32> to vector<28x144xf32>
    %cst_14 = arith.constant dense<0.000000e+00> : vector<24x144xf32>
    %21 = tpu.matmul %18, %20, %cst_14 {dimension_numbers = #tpu.dot_dimension_numbers<[1], [0], [0], [1], [0, 0, 1, 1], [], []>} : vector<24x28xf32>, vector<28x144xf32>, vector<24x144xf32> -> vector<24x144xf32>
    %22 = arith.addf %17, %21 : vector<24x144xf32>
    %23 = vector.extract_strided_slice %1 {offsets = [4, 0], sizes = [24, 28], strides = [1, 1]} : vector<28x28xf32> to vector<24x28xf32>
    %c4 = arith.constant 4 : index
    %c0_15 = arith.constant 0 : index
    %c0_16 = arith.constant 0 : index
    %24 = vector.load %arg2[%c4, %c0_15, %c0_16] : memref<5x28x144xf32, #tpu.memory_space<vmem>>, vector<1x28x144xf32>
    %25 = vector.shape_cast %24 : vector<1x28x144xf32> to vector<28x144xf32>
    %cst_17 = arith.constant dense<0.000000e+00> : vector<24x144xf32>
    %26 = tpu.matmul %23, %25, %cst_17 {dimension_numbers = #tpu.dot_dimension_numbers<[1], [0], [0], [1], [0, 0, 1, 1], [], []>} : vector<24x28xf32>, vector<28x144xf32>, vector<24x144xf32> -> vector<24x144xf32>
    %27 = arith.addf %22, %26 : vector<24x144xf32>
    %c0_18 = arith.constant 0 : index
    %c0_19 = arith.constant 0 : index
    %28 = vector.load %arg3[%c0_18, %c0_19] : memref<1x144xf32, #tpu.memory_space<vmem>>, vector<1x144xf32>
    %29 = vector.broadcast %28 : vector<1x144xf32> to vector<24x144xf32>
    %30 = arith.addf %27, %29 : vector<24x144xf32>
    %cst_20 = arith.constant 0.000000e+00 : f32
    %31 = vector.broadcast %cst_20 : f32 to vector<24x144xf32>
    %32 = arith.maximumf %30, %31 : vector<24x144xf32>
    %33 = vector.extract_strided_slice %32 {offsets = [0, 0], sizes = [23, 144], strides = [1, 1]} : vector<24x144xf32> to vector<23x144xf32>
    %34 = vector.extract_strided_slice %32 {offsets = [1, 0], sizes = [23, 144], strides = [1, 1]} : vector<24x144xf32> to vector<23x144xf32>
    %35 = arith.maximumf %33, %34 : vector<23x144xf32>
    %c0_21 = arith.constant 0 : index
    %c0_22 = arith.constant 0 : index
    %36 = vector.load %arg4[%c0_21, %c0_22] : memref<12x23xf32, #tpu.memory_space<vmem>>, vector<12x23xf32>
    %cst_23 = arith.constant dense<0.000000e+00> : vector<12x144xf32>
    %37 = tpu.matmul %36, %35, %cst_23 {dimension_numbers = #tpu.dot_dimension_numbers<[1], [0], [0], [1], [0, 0, 1, 1], [], []>} : vector<12x23xf32>, vector<23x144xf32>, vector<12x144xf32> -> vector<12x144xf32>
    %c0_24 = arith.constant 0 : index
    %c0_25 = arith.constant 0 : index
    %38 = vector.load %arg5[%c0_24, %c0_25] : memref<144x72xf32, #tpu.memory_space<vmem>>, vector<144x72xf32>
    %cst_26 = arith.constant dense<0.000000e+00> : vector<12x72xf32>
    %39 = tpu.matmul %37, %38, %cst_26 {dimension_numbers = #tpu.dot_dimension_numbers<[1], [0], [0], [1], [0, 0, 1, 1], [], []>} : vector<12x144xf32>, vector<144x72xf32>, vector<12x72xf32> -> vector<12x72xf32>
    %c0_27 = arith.constant 0 : index
    %c0_28 = arith.constant 0 : index
    %40 = vector.load %arg6[%c0_27, %c0_28] : memref<144x72xf32, #tpu.memory_space<vmem>>, vector<144x72xf32>
    %cst_29 = arith.constant dense<0.000000e+00> : vector<12x72xf32>
    %41 = tpu.matmul %37, %40, %cst_29 {dimension_numbers = #tpu.dot_dimension_numbers<[1], [0], [0], [1], [0, 0, 1, 1], [], []>} : vector<12x144xf32>, vector<144x72xf32>, vector<12x72xf32> -> vector<12x72xf32>
    %42 = arith.maximumf %39, %41 : vector<12x72xf32>
    %cst_30 = arith.constant 0.000000e+00 : f32
    %43 = vector.broadcast %cst_30 : f32 to vector<8x128xf32>
    %44 = vector.extract_strided_slice %42 {offsets = [0, 0], sizes = [8, 72], strides = [1, 1]} : vector<12x72xf32> to vector<8x72xf32>
    %c0_31 = arith.constant 0 : index
    %c0_32 = arith.constant 0 : index
    %c0_33 = arith.constant 0 : index
    %45 = vector.load %arg7[%c0_31, %c0_32, %c0_33] : memref<5x72x128xf32, #tpu.memory_space<vmem>>, vector<1x72x128xf32>
    %46 = vector.shape_cast %45 : vector<1x72x128xf32> to vector<72x128xf32>
    %cst_34 = arith.constant dense<0.000000e+00> : vector<8x128xf32>
    %47 = tpu.matmul %44, %46, %cst_34 {dimension_numbers = #tpu.dot_dimension_numbers<[1], [0], [0], [1], [0, 0, 1, 1], [], []>} : vector<8x72xf32>, vector<72x128xf32>, vector<8x128xf32> -> vector<8x128xf32>
    %48 = arith.addf %43, %47 : vector<8x128xf32>
    %49 = vector.extract_strided_slice %42 {offsets = [1, 0], sizes = [8, 72], strides = [1, 1]} : vector<12x72xf32> to vector<8x72xf32>
    %c1_35 = arith.constant 1 : index
    %c0_36 = arith.constant 0 : index
    %c0_37 = arith.constant 0 : index
    %50 = vector.load %arg7[%c1_35, %c0_36, %c0_37] : memref<5x72x128xf32, #tpu.memory_space<vmem>>, vector<1x72x128xf32>
    %51 = vector.shape_cast %50 : vector<1x72x128xf32> to vector<72x128xf32>
    %cst_38 = arith.constant dense<0.000000e+00> : vector<8x128xf32>
    %52 = tpu.matmul %49, %51, %cst_38 {dimension_numbers = #tpu.dot_dimension_numbers<[1], [0], [0], [1], [0, 0, 1, 1], [], []>} : vector<8x72xf32>, vector<72x128xf32>, vector<8x128xf32> -> vector<8x128xf32>
    %53 = arith.addf %48, %52 : vector<8x128xf32>
    %54 = vector.extract_strided_slice %42 {offsets = [2, 0], sizes = [8, 72], strides = [1, 1]} : vector<12x72xf32> to vector<8x72xf32>
    %c2_39 = arith.constant 2 : index
    %c0_40 = arith.constant 0 : index
    %c0_41 = arith.constant 0 : index
    %55 = vector.load %arg7[%c2_39, %c0_40, %c0_41] : memref<5x72x128xf32, #tpu.memory_space<vmem>>, vector<1x72x128xf32>
    %56 = vector.shape_cast %55 : vector<1x72x128xf32> to vector<72x128xf32>
    %cst_42 = arith.constant dense<0.000000e+00> : vector<8x128xf32>
    %57 = tpu.matmul %54, %56, %cst_42 {dimension_numbers = #tpu.dot_dimension_numbers<[1], [0], [0], [1], [0, 0, 1, 1], [], []>} : vector<8x72xf32>, vector<72x128xf32>, vector<8x128xf32> -> vector<8x128xf32>
    %58 = arith.addf %53, %57 : vector<8x128xf32>
    %59 = vector.extract_strided_slice %42 {offsets = [3, 0], sizes = [8, 72], strides = [1, 1]} : vector<12x72xf32> to vector<8x72xf32>
    %c3_43 = arith.constant 3 : index
    %c0_44 = arith.constant 0 : index
    %c0_45 = arith.constant 0 : index
    %60 = vector.load %arg7[%c3_43, %c0_44, %c0_45] : memref<5x72x128xf32, #tpu.memory_space<vmem>>, vector<1x72x128xf32>
    %61 = vector.shape_cast %60 : vector<1x72x128xf32> to vector<72x128xf32>
    %cst_46 = arith.constant dense<0.000000e+00> : vector<8x128xf32>
    %62 = tpu.matmul %59, %61, %cst_46 {dimension_numbers = #tpu.dot_dimension_numbers<[1], [0], [0], [1], [0, 0, 1, 1], [], []>} : vector<8x72xf32>, vector<72x128xf32>, vector<8x128xf32> -> vector<8x128xf32>
    %63 = arith.addf %58, %62 : vector<8x128xf32>
    %64 = vector.extract_strided_slice %42 {offsets = [4, 0], sizes = [8, 72], strides = [1, 1]} : vector<12x72xf32> to vector<8x72xf32>
    %c4_47 = arith.constant 4 : index
    %c0_48 = arith.constant 0 : index
    %c0_49 = arith.constant 0 : index
    %65 = vector.load %arg7[%c4_47, %c0_48, %c0_49] : memref<5x72x128xf32, #tpu.memory_space<vmem>>, vector<1x72x128xf32>
    %66 = vector.shape_cast %65 : vector<1x72x128xf32> to vector<72x128xf32>
    %cst_50 = arith.constant dense<0.000000e+00> : vector<8x128xf32>
    %67 = tpu.matmul %64, %66, %cst_50 {dimension_numbers = #tpu.dot_dimension_numbers<[1], [0], [0], [1], [0, 0, 1, 1], [], []>} : vector<8x72xf32>, vector<72x128xf32>, vector<8x128xf32> -> vector<8x128xf32>
    %68 = arith.addf %63, %67 : vector<8x128xf32>
    %c0_51 = arith.constant 0 : index
    %c0_52 = arith.constant 0 : index
    %69 = vector.load %arg8[%c0_51, %c0_52] : memref<1x128xf32, #tpu.memory_space<vmem>>, vector<1x128xf32>
    %70 = vector.broadcast %69 : vector<1x128xf32> to vector<8x128xf32>
    %71 = arith.addf %68, %70 : vector<8x128xf32>
    %cst_53 = arith.constant 0.000000e+00 : f32
    %72 = vector.broadcast %cst_53 : f32 to vector<8x128xf32>
    %73 = arith.maximumf %71, %72 : vector<8x128xf32>
    %74 = vector.extract_strided_slice %73 {offsets = [0, 0], sizes = [7, 128], strides = [1, 1]} : vector<8x128xf32> to vector<7x128xf32>
    %75 = vector.extract_strided_slice %73 {offsets = [1, 0], sizes = [7, 128], strides = [1, 1]} : vector<8x128xf32> to vector<7x128xf32>
    %76 = arith.maximumf %74, %75 : vector<7x128xf32>
    %c0_54 = arith.constant 0 : index
    %c0_55 = arith.constant 0 : index
    %77 = vector.load %arg9[%c0_54, %c0_55] : memref<4x7xf32, #tpu.memory_space<vmem>>, vector<4x7xf32>
    %cst_56 = arith.constant dense<0.000000e+00> : vector<4x128xf32>
    %78 = tpu.matmul %77, %76, %cst_56 {dimension_numbers = #tpu.dot_dimension_numbers<[1], [0], [0], [1], [0, 0, 1, 1], [], []>} : vector<4x7xf32>, vector<7x128xf32>, vector<4x128xf32> -> vector<4x128xf32>
    %c0_57 = arith.constant 0 : index
    %c0_58 = arith.constant 0 : index
    %79 = vector.load %arg10[%c0_57, %c0_58] : memref<128x64xf32, #tpu.memory_space<vmem>>, vector<128x64xf32>
    %cst_59 = arith.constant dense<0.000000e+00> : vector<4x64xf32>
    %80 = tpu.matmul %78, %79, %cst_59 {dimension_numbers = #tpu.dot_dimension_numbers<[1], [0], [0], [1], [0, 0, 1, 1], [], []>} : vector<4x128xf32>, vector<128x64xf32>, vector<4x64xf32> -> vector<4x64xf32>
    %c0_60 = arith.constant 0 : index
    %c0_61 = arith.constant 0 : index
    %81 = vector.load %arg11[%c0_60, %c0_61] : memref<128x64xf32, #tpu.memory_space<vmem>>, vector<128x64xf32>
    %cst_62 = arith.constant dense<0.000000e+00> : vector<4x64xf32>
    %82 = tpu.matmul %78, %81, %cst_62 {dimension_numbers = #tpu.dot_dimension_numbers<[1], [0], [0], [1], [0, 0, 1, 1], [], []>} : vector<4x128xf32>, vector<128x64xf32>, vector<4x64xf32> -> vector<4x64xf32>
    %83 = arith.maximumf %80, %82 : vector<4x64xf32>
    %cst_63 = arith.constant 0.000000e+00 : f32
    %84 = vector.broadcast %cst_63 : f32 to vector<1x120xf32>
    %85 = vector.extract_strided_slice %83 {offsets = [0, 0], sizes = [1, 64], strides = [1, 1]} : vector<4x64xf32> to vector<1x64xf32>
    %c0_64 = arith.constant 0 : index
    %c0_65 = arith.constant 0 : index
    %86 = vector.load %arg12[%c0_64, %c0_65] : memref<256x120xf32, #tpu.memory_space<vmem>>, vector<64x120xf32>
    %cst_66 = arith.constant dense<0.000000e+00> : vector<1x120xf32>
    %87 = tpu.matmul %85, %86, %cst_66 {dimension_numbers = #tpu.dot_dimension_numbers<[1], [0], [0], [1], [0, 0, 1, 1], [], []>} : vector<1x64xf32>, vector<64x120xf32>, vector<1x120xf32> -> vector<1x120xf32>
    %88 = arith.addf %84, %87 : vector<1x120xf32>
    %89 = vector.extract_strided_slice %83 {offsets = [1, 0], sizes = [1, 64], strides = [1, 1]} : vector<4x64xf32> to vector<1x64xf32>
    %c64 = arith.constant 64 : index
    %c0_67 = arith.constant 0 : index
    %90 = vector.load %arg12[%c64, %c0_67] : memref<256x120xf32, #tpu.memory_space<vmem>>, vector<64x120xf32>
    %cst_68 = arith.constant dense<0.000000e+00> : vector<1x120xf32>
    %91 = tpu.matmul %89, %90, %cst_68 {dimension_numbers = #tpu.dot_dimension_numbers<[1], [0], [0], [1], [0, 0, 1, 1], [], []>} : vector<1x64xf32>, vector<64x120xf32>, vector<1x120xf32> -> vector<1x120xf32>
    %92 = arith.addf %88, %91 : vector<1x120xf32>
    %93 = vector.extract_strided_slice %83 {offsets = [2, 0], sizes = [1, 64], strides = [1, 1]} : vector<4x64xf32> to vector<1x64xf32>
    %c128 = arith.constant 128 : index
    %c0_69 = arith.constant 0 : index
    %94 = vector.load %arg12[%c128, %c0_69] : memref<256x120xf32, #tpu.memory_space<vmem>>, vector<64x120xf32>
    %cst_70 = arith.constant dense<0.000000e+00> : vector<1x120xf32>
    %95 = tpu.matmul %93, %94, %cst_70 {dimension_numbers = #tpu.dot_dimension_numbers<[1], [0], [0], [1], [0, 0, 1, 1], [], []>} : vector<1x64xf32>, vector<64x120xf32>, vector<1x120xf32> -> vector<1x120xf32>
    %96 = arith.addf %92, %95 : vector<1x120xf32>
    %97 = vector.extract_strided_slice %83 {offsets = [3, 0], sizes = [1, 64], strides = [1, 1]} : vector<4x64xf32> to vector<1x64xf32>
    %c192 = arith.constant 192 : index
    %c0_71 = arith.constant 0 : index
    %98 = vector.load %arg12[%c192, %c0_71] : memref<256x120xf32, #tpu.memory_space<vmem>>, vector<64x120xf32>
    %cst_72 = arith.constant dense<0.000000e+00> : vector<1x120xf32>
    %99 = tpu.matmul %97, %98, %cst_72 {dimension_numbers = #tpu.dot_dimension_numbers<[1], [0], [0], [1], [0, 0, 1, 1], [], []>} : vector<1x64xf32>, vector<64x120xf32>, vector<1x120xf32> -> vector<1x120xf32>
    %100 = arith.addf %96, %99 : vector<1x120xf32>
    %c0_73 = arith.constant 0 : index
    %c0_74 = arith.constant 0 : index
    %101 = vector.load %arg13[%c0_73, %c0_74] : memref<1x120xf32, #tpu.memory_space<vmem>>, vector<1x120xf32>
    %102 = arith.addf %100, %101 : vector<1x120xf32>
    %cst_75 = arith.constant 0.000000e+00 : f32
    %103 = vector.broadcast %cst_75 : f32 to vector<1x120xf32>
    %104 = arith.maximumf %102, %103 : vector<1x120xf32>
    %c0_76 = arith.constant 0 : index
    %c0_77 = arith.constant 0 : index
    %105 = vector.load %arg14[%c0_76, %c0_77] : memref<120x84xf32, #tpu.memory_space<vmem>>, vector<120x84xf32>
    %cst_78 = arith.constant dense<0.000000e+00> : vector<1x84xf32>
    %106 = tpu.matmul %104, %105, %cst_78 {dimension_numbers = #tpu.dot_dimension_numbers<[1], [0], [0], [1], [0, 0, 1, 1], [], []>} : vector<1x120xf32>, vector<120x84xf32>, vector<1x84xf32> -> vector<1x84xf32>
    %c0_79 = arith.constant 0 : index
    %c0_80 = arith.constant 0 : index
    %107 = vector.load %arg15[%c0_79, %c0_80] : memref<1x84xf32, #tpu.memory_space<vmem>>, vector<1x84xf32>
    %108 = arith.addf %106, %107 : vector<1x84xf32>
    %cst_81 = arith.constant 0.000000e+00 : f32
    %109 = vector.broadcast %cst_81 : f32 to vector<1x84xf32>
    %110 = arith.maximumf %108, %109 : vector<1x84xf32>
    %c0_82 = arith.constant 0 : index
    %c0_83 = arith.constant 0 : index
    %111 = vector.load %arg16[%c0_82, %c0_83] : memref<84x10xf32, #tpu.memory_space<vmem>>, vector<84x10xf32>
    %cst_84 = arith.constant dense<0.000000e+00> : vector<1x10xf32>
    %112 = tpu.matmul %110, %111, %cst_84 {dimension_numbers = #tpu.dot_dimension_numbers<[1], [0], [0], [1], [0, 0, 1, 1], [], []>} : vector<1x84xf32>, vector<84x10xf32>, vector<1x10xf32> -> vector<1x10xf32>
    %c0_85 = arith.constant 0 : index
    %c0_86 = arith.constant 0 : index
    %113 = vector.load %arg17[%c0_85, %c0_86] : memref<1x10xf32, #tpu.memory_space<vmem>>, vector<1x10xf32>
    %114 = arith.addf %112, %113 : vector<1x10xf32>
    %c0_87 = arith.constant 0 : index
    %c0_88 = arith.constant 0 : index
    %c0_89 = arith.constant 0 : index
    %115 = vector.load %arg18[%c0_87, %c0_88, %c0_89] : memref<1x1x10xf32, #tpu.memory_space<vmem>>, vector<1x1x10xf32>
    %116 = vector.shape_cast %115 : vector<1x1x10xf32> to vector<1x10xf32>
    %117 = vector.shape_cast %114 : vector<1x10xf32> to vector<1x1x10xf32>
    tpu.vector_store %arg18[%c0_87, %c0_88, %c0_89], %117 {strides = array<i32>} : memref<1x1x10xf32, #tpu.memory_space<vmem>>, vector<1x1x10xf32>,
    return
  }
  func.func @transform_0(%arg0: i32) -> (i32, i32, i32) {
    %c0_i32 = arith.constant 0 : i32
    %c0_i32_0 = arith.constant 0 : i32
    %c0_i32_1 = arith.constant 0 : i32
    return %arg0, %c0_i32, %c0_i32_0 : i32, i32, i32
  }
  func.func @transform_1(%arg0: i32) -> (i32, i32, i32) {
    %c0_i32 = arith.constant 0 : i32
    %c0_i32_0 = arith.constant 0 : i32
    %c0_i32_1 = arith.constant 0 : i32
    %c0_i32_2 = arith.constant 0 : i32
    return %c0_i32, %c0_i32_0, %c0_i32_1 : i32, i32, i32
  }
  func.func @transform_2(%arg0: i32) -> (i32, i32) {
    %c0_i32 = arith.constant 0 : i32
    %c0_i32_0 = arith.constant 0 : i32
    %c0_i32_1 = arith.constant 0 : i32
    return %c0_i32, %c0_i32_0 : i32, i32
  }
  func.func @transform_3(%arg0: i32) -> (i32, i32) {
    %c0_i32 = arith.constant 0 : i32
    %c0_i32_0 = arith.constant 0 : i32
    %c0_i32_1 = arith.constant 0 : i32
    return %c0_i32, %c0_i32_0 : i32, i32
  }
  func.func @transform_4(%arg0: i32) -> (i32, i32) {
    %c0_i32 = arith.constant 0 : i32
    %c0_i32_0 = arith.constant 0 : i32
    %c0_i32_1 = arith.constant 0 : i32
    return %c0_i32, %c0_i32_0 : i32, i32
  }
  func.func @transform_5(%arg0: i32) -> (i32, i32) {
    %c0_i32 = arith.constant 0 : i32
    %c0_i32_0 = arith.constant 0 : i32
    %c0_i32_1 = arith.constant 0 : i32
    return %c0_i32, %c0_i32_0 : i32, i32
  }
  func.func @transform_6(%arg0: i32) -> (i32, i32, i32) {
    %c0_i32 = arith.constant 0 : i32
    %c0_i32_0 = arith.constant 0 : i32
    %c0_i32_1 = arith.constant 0 : i32
    %c0_i32_2 = arith.constant 0 : i32
    return %c0_i32, %c0_i32_0, %c0_i32_1 : i32, i32, i32
  }
  func.func @transform_7(%arg0: i32) -> (i32, i32) {
    %c0_i32 = arith.constant 0 : i32
    %c0_i32_0 = arith.constant 0 : i32
    %c0_i32_1 = arith.constant 0 : i32
    return %c0_i32, %c0_i32_0 : i32, i32
  }
  func.func @transform_8(%arg0: i32) -> (i32, i32) {
    %c0_i32 = arith.constant 0 : i32
    %c0_i32_0 = arith.constant 0 : i32
    %c0_i32_1 = arith.constant 0 : i32
    return %c0_i32, %c0_i32_0 : i32, i32
  }
  func.func @transform_9(%arg0: i32) -> (i32, i32) {
    %c0_i32 = arith.constant 0 : i32
    %c0_i32_0 = arith.constant 0 : i32
    %c0_i32_1 = arith.constant 0 : i32
    return %c0_i32, %c0_i32_0 : i32, i32
  }
  func.func @transform_10(%arg0: i32) -> (i32, i32) {
    %c0_i32 = arith.constant 0 : i32
    %c0_i32_0 = arith.constant 0 : i32
    %c0_i32_1 = arith.constant 0 : i32
    return %c0_i32, %c0_i32_0 : i32, i32
  }
  func.func @transform_11(%arg0: i32) -> (i32, i32) {
    %c0_i32 = arith.constant 0 : i32
    %c0_i32_0 = arith.constant 0 : i32
    %c0_i32_1 = arith.constant 0 : i32
    return %c0_i32, %c0_i32_0 : i32, i32
  }
  func.func @transform_12(%arg0: i32) -> (i32, i32) {
    %c0_i32 = arith.constant 0 : i32
    %c0_i32_0 = arith.constant 0 : i32
    %c0_i32_1 = arith.constant 0 : i32
    return %c0_i32, %c0_i32_0 : i32, i32
  }
  func.func @transform_13(%arg0: i32) -> (i32, i32) {
    %c0_i32 = arith.constant 0 : i32
    %c0_i32_0 = arith.constant 0 : i32
    %c0_i32_1 = arith.constant 0 : i32
    return %c0_i32, %c0_i32_0 : i32, i32
  }
  func.func @transform_14(%arg0: i32) -> (i32, i32) {
    %c0_i32 = arith.constant 0 : i32
    %c0_i32_0 = arith.constant 0 : i32
    %c0_i32_1 = arith.constant 0 : i32
    return %c0_i32, %c0_i32_0 : i32, i32
  }
  func.func @transform_15(%arg0: i32) -> (i32, i32) {
    %c0_i32 = arith.constant 0 : i32
    %c0_i32_0 = arith.constant 0 : i32
    %c0_i32_1 = arith.constant 0 : i32
    return %c0_i32, %c0_i32_0 : i32, i32
  }
  func.func @transform_16(%arg0: i32) -> (i32, i32) {
    %c0_i32 = arith.constant 0 : i32
    %c0_i32_0 = arith.constant 0 : i32
    %c0_i32_1 = arith.constant 0 : i32
    return %c0_i32, %c0_i32_0 : i32, i32
  }
  func.func @transform_17(%arg0: i32) -> (i32, i32, i32) {
    %c0_i32 = arith.constant 0 : i32
    %c0_i32_0 = arith.constant 0 : i32
    %c0_i32_1 = arith.constant 0 : i32
    return %arg0, %c0_i32, %c0_i32_0 : i32, i32, i32
  }
}

</mosaic_0001>

<bundles_post_ra>
// kernel: net_forward.1
= control target key start
LH: loop header
LB: loop body
LE: loop exit
PB: predicated region body
PF: predicated region fallthrough
CT: control target
= control target key end

     0   :  { %s5409_s0 = inlined_call_operand.vmem [shape: f32[2,28,28], index: 0, kind: input, shape index: {}]   ;;  %s5410_s1 = inlined_call_operand.vmem [shape: f32[5,28,144], index: 1, kind: input, shape index: {}]   ;;  %s5411_s2 = inlined_call_operand.hbm [shape: f32[1,144], index: 2, kind: input, shape index: {}]   ;;  %s5412_s3 = inlined_call_operand.hbm [shape: f32[12,23], index: 3, kind: input, shape index: {}]   ;;  %s5413_s4 = inlined_call_operand.vmem [shape: f32[144,72], index: 4, kind: input, shape index: {}]   ;;  %s5414_s5 = inlined_call_operand.vmem [shape: f32[144,72], index: 5, kind: input, shape index: {}]   ;;  %s5415_s6 = inlined_call_operand.vmem [shape: f32[5,72,128], index: 6, kind: input, shape index: {}]   ;;  %s5416_s7 = inlined_call_operand.hbm [shape: f32[1,128], index: 7, kind: input, shape index: {}]   ;;  %s5417_s8 = inlined_call_operand.vmem [shape: f32[4,7], index: 8, kind: input, shape index: {}]   ;;  %s5418_s9 = inlined_call_operand.vmem [shape: f32[128,64], index: 9, kind: input, shape index: {}]   ;;  %s5419_s10 = inlined_call_operand.vmem [shape: f32[128,64], index: 10, kind: input, shape index: {}]   ;;  %s5420_s11 = inlined_call_operand.vmem [shape: f32[256,120], index: 11, kind: input, shape index: {}]   ;;  %s5421_s12 = inlined_call_operand.hbm [shape: f32[1,120], index: 12, kind: input, shape index: {}]   ;;  %s5422_s13 = inlined_call_operand.vmem [shape: f32[120,84], index: 13, kind: input, shape index: {}]   ;;  %s5423_s14 = inlined_call_operand.hbm [shape: f32[1,84], index: 14, kind: input, shape index: {}]   ;;  %s5424_s15 = inlined_call_operand.vmem [shape: f32[84,10], index: 15, kind: input, shape index: {}]   ;;  %s5425_s16 = inlined_call_operand.hbm [shape: f32[1,10], index: 16, kind: input, shape index: {}]   ;;  %s5426_s17 = inlined_call_operand.hbm [shape: f32[2,1,10], index: 17, kind: output, shape index: {}]  }
   0x1   :  { %5443 = sst [smem:[#allocation27_spill]] %s5409_s0 }
   0x2   :  { %5444 = sst [smem:[#allocation28_spill]] %s5410_s1 }
   0x3   :  { %5445 = sst [smem:[#allocation29_spill]] %s5422_s13 }
   0x4   :  { %5446 = sst [smem:[#allocation30_spill]] %s5424_s15 }
   0x5   :  { %5447 = sst [smem:[#allocation31_spill]] %s5426_s17 }
   0x6   :  { %22 = vsyncpa [#allocation3], 0 }
   0x7   :  { %23 = vsyncpa [#allocation6], 0 }
   0x8   :  { %24 = vsyncpa [#allocation9], 0 }
   0x9   :  { %25 = vsyncpa [#allocation12], 0 }
   0xa   :  { %26 = vsyncpa [#allocation4], 0 }
   0xb   :  { %28 = vsyncpa [#allocation4 + $0x1], 0  ;;  %s4255_s24 = smov 0   ;;  %s4257_s25 = smov 0  }
   0xc   :  { %s4259_s26 = smov 0   ;;  %s4261_s27 = smov 0  }
   0xd LB: > { %5448 = sst [smem:[#allocation19_spill]] %s4138_s24  ;;  %s4276_s28 = sadd.s32 4294967295, %s4150_s27   ;;  %s4150_s27 = sphi %s4261_s27, %s5486_s27   ;;  %s4146_s26 = sphi %s4259_s26, %s5489_s26   ;;  %s4142_s25 = sphi %s4257_s25, %s5488_s25   ;;  %s4138_s24 = sphi %s4255_s24, %s5487_s24  }
   0xe   : > { %5449 = sst [smem:[#allocation20_spill]] %s4142_s25  ;;  %s2872_s29 = sadd.s32 4294967294, %s4150_s27  }
   0xf   : > { %5450 = sst [smem:[#allocation21_spill]] %s4146_s26  ;;  %s4280_s0 = sadd.s32 1, %s4150_s27  }
  0x10   : > { %5451 = sst [smem:[#allocation22_spill]] %s4150_s27  ;;  %s403_s30 = sadd.s32 1, %s4146_s26 }
  0x11   : > { %5452 = sst [smem:[#allocation23_spill]] %s4280_s0  ;;  %s400_s18 = ssub.s32 %s4150_s27, %s4280_s0 }
  0x12   : > { %p413_p0 = scmp.ne.s32.totalorder %s4146_s26, %s4142_s25  ;;  %p401_p1 = scmp.eq.s32.totalorder %s400_s18, 0 }
  0x13   : > { %p414_p2 = scmp.eq.s32.totalorder %s4276_s28, 1  ;;  %p419_p3 = scmp.ne.s32.totalorder %s4142_s25, %s4138_s24 }
  0x14   : > { %p420_p4 = scmp.eq.s32.totalorder %s2872_s29, 1  ;;  %p2873_p7 = scmp.ge.s32.totalorder %s4150_s27, 1 }
  0x15   : > { %s4291_s19 = scalar_select %p401_p1, %s4146_s26, %s403_s30  }
  0x16   : > { %p4293_p5 = por %p414_p2, %p413_p0  ;;  %p4297_p6 = por %p420_p4, %p419_p3 }
  0x17   : > { %5453 = sst [smem:[#allocation24_spill]] %s4291_s19  ;;  %p427_p8 = scmp.lt.s32.totalorder %s4150_s27, 3 }
  0x18   : > { %s5454_s1 = scalar_select %p4293_p5, 1, 0 }
  0x19   : > { %s5456_s20 = scalar_select %p4297_p6, 1, 0 }
  0x1a   : > { %5455 = sst [smem:[#allocation25_spill]] %s5454_s1  ;;  %p5435_p9 = scmp.eq.s32.totalorder %s4276_s28, 0 }
  0x1b   : > { %5457 = sst [smem:[#allocation26_spill]] %s5456_s20  ;;  %p4304_p10 = pnand %p2873_p7, %p427_p8 }
  0x1c   : > { %s4152_s22 = smov [#allocation5]   ;;  %s4153_s30 = smov [#allocation8]  }
  0x1d   : > { %s5458_s21 = scalar_select %p4304_p10, 1, 0 }
  0x1e   : > { %s453_s23 = sshll.u32 %s4152_s22, 4  ;;  %p3824_p11 = pneg %p4304_p10  ;;  %s4310_s23 = int_to_ptr.vmem [resolvable:$true] %s453_s23 }
  0x1f   : > { %s499_s18 = sshll.u32 %s4153_s30, 4  ;;  %s4154_s19 = smov [#allocation2]   ;;  %s4318_s18 = int_to_ptr.vmem [resolvable:$true] %s499_s18 }
  0x20   : > { %p4314_p12 = pnand %p5435_p9, %p3824_p11  ;;  %s4320_s26 = sshll.u32 %s4154_s19, 4  ;;  %s444_s26 = int_to_ptr.vmem [resolvable:$true] %s4320_s26 }
  0x21   : > { %s3904_s22 = scalar_lea.hbm %s5412_s3, 256 }
  0x22   : > { %p3905_p13 = scmp.ne.s32.totalorder %s5412_s3, %s3904_s22  ;;  %p4330_p0 = pneg %p4314_p12 }
  0x23   : > { %p3911_p3 = scmp.lt.u32.totalorder %s3904_s22, %s5412_s3 }
  0x24   : > { %p3907_p1 = pnand %p4330_p0, %p3905_p13 }
  0x26   : > { %p3908_p2 = pneg %p3907_p1 }
  0x28   : > { %p3913_p4 = pnand %p3911_p3, %p3908_p2 }
  0x2a   : > { %3916 = shalt.err (!%p3913_p4)
}
  0x2b   : > { %s3917_s24 = scalar_lea.vmem %s4310_s23, 256  ;;  %p3925_p9 = scmp.lt.s32.totalorder %s4310_s23, %s4310_s23 }
  0x2c   : > { %p3918_p7 = scmp.ne.s32.totalorder %s4310_s23, %s3917_s24  ;;  %p3926_p6 = scmp.lt.s32.totalorder %s3917_s24, %s3917_s24 }
  0x2e   : > { %p3920_p8 = pnand %p3918_p7, %p4330_p0  ;;  %p3927_p13 = por %p3926_p6, %p3925_p9 }
  0x30   : > { %p3921_p11 = pneg %p3920_p8 }
  0x32   : > { %p3928_p1 = pnand %p3927_p13, %p3921_p11 }
  0x34   : > { %3931 = shalt.err (!%p3928_p1)
}
  0x35   : > { %s4155_s27 = smov 128   ;;  %s4156_s0 = smov 8  }
  0x36   : > { %3830 = dma.hbm_to_vmem [thread:$0]  (!%p4314_p12), %s5412_s3, 256, %s4310_s23, [#allocation6], %s4155_s27, %s4155_s27, %s4156_s0  }
  0x37   : > { %s3932_s1 = scalar_lea.hbm %s5421_s12, 16 }
  0x38   : > { %p3933_p6 = scmp.ne.s32.totalorder %s5421_s12, %s3932_s1  ;;  %p3939_p3 = scmp.lt.u32.totalorder %s3932_s1, %s5421_s12 }
  0x3a   : > { %p3935_p9 = pnand %p3933_p6, %p4330_p0 }
  0x3c   : > { %p3936_p2 = pneg %p3935_p9 }
  0x3e   : > { %p3941_p4 = pnand %p3939_p3, %p3936_p2 }
  0x40   : > { %3944 = shalt.err (!%p3941_p4)
}
  0x41   : > { %s3945_s23 = scalar_lea.vmem %s4318_s18, 16  ;;  %s3952_s15 = scalar_lea.vmem %s4318_s18, 32 }
  0x42   : > { %p3946_p7 = scmp.ne.s32.totalorder %s4318_s18, %s3945_s23  ;;  %p3953_p13 = scmp.lt.s32.totalorder %s4318_s18, %s4318_s18 }
  0x43   : > { %p3954_p1 = scmp.lt.s32.totalorder %s3952_s15, %s3945_s23 }
  0x44   : > { %p3948_p8 = pnand %p3946_p7, %p4330_p0 }
  0x45   : > { %p3955_p6 = por %p3954_p1, %p3953_p13 }
  0x46   : > { %p3949_p11 = pneg %p3948_p8 }
  0x48   : > { %p3956_p9 = pnand %p3955_p6, %p3949_p11 }
  0x4a   : > { %3959 = shalt.err (!%p3956_p9)
}
  0x4b   : > { %3836 = dma.hbm_to_vmem [thread:$0]  (!%p4314_p12), %s5421_s12, 16, %s4318_s18, [#allocation9]  }
  0x4c   : > { %s3960_s0 = scalar_lea.hbm %s5411_s2, 32 }
  0x4d   : > { %p3961_p2 = scmp.ne.s32.totalorder %s5411_s2, %s3960_s0  ;;  %p3967_p7 = scmp.lt.u32.totalorder %s3960_s0, %s5411_s2 }
  0x4f   : > { %p3963_p3 = pnand %p3961_p2, %p4330_p0 }
  0x51   : > { %p3964_p4 = pneg %p3963_p3 }
  0x53   : > { %p3969_p8 = pnand %p3967_p7, %p3964_p4 }
  0x55   : > { %3972 = shalt.err (!%p3969_p8)
}
  0x56   : > { %s3973_s24 = scalar_lea.vmem %s444_s26, 32  ;;  %p3981_p6 = scmp.lt.s32.totalorder %s444_s26, %s444_s26 }
  0x57   : > { %p3974_p11 = scmp.ne.s32.totalorder %s444_s26, %s3973_s24  ;;  %p3982_p9 = scmp.lt.s32.totalorder %s3973_s24, %s3973_s24 }
  0x59   : > { %p3976_p13 = pnand %p3974_p11, %p4330_p0  ;;  %p3983_p5 = por %p3982_p9, %p3981_p6 }
  0x5b   : > { %p3977_p1 = pneg %p3976_p13 }
  0x5d   : > { %p3984_p10 = pnand %p3983_p5, %p3977_p1 }
  0x5f   : > { %3987 = shalt.err (!%p3984_p10)
}
  0x60   : > { %3827 = dma.hbm_to_vmem [thread:$0]  (!%p4314_p12), %s5411_s2, 32, %s444_s26, [#allocation3]  }
  0x61   : > { %s4157_s15 = smov [#allocation7]   ;;  %s4158_s25 = smov [#allocation10]  }
  0x62   : > { %s476_s13 = sshll.u32 %s4157_s15, 4  ;;  %s513_s1 = sshll.u32 %s4158_s25, 4  ;;  %s477_s13 = int_to_ptr.vmem [resolvable:$true] %s476_s13  ;;  %s514_s1 = int_to_ptr.vmem [resolvable:$true] %s513_s1 }
  0x63   : > { %s3988_s20 = scalar_lea.hbm %s5416_s7, 16 }
  0x64   : > { %p3989_p5 = scmp.ne.s32.totalorder %s5416_s7, %s3988_s20  ;;  %p3995_p3 = scmp.lt.u32.totalorder %s3988_s20, %s5416_s7 }
  0x66   : > { %p3991_p10 = pnand %p3989_p5, %p4330_p0 }
  0x68   : > { %p3992_p2 = pneg %p3991_p10 }
  0x6a   : > { %p3997_p4 = pnand %p3995_p3, %p3992_p2 }
  0x6c   : > { %4000 = shalt.err (!%p3997_p4)
}
  0x6d   : > { %s4001_s26 = scalar_lea.vmem %s477_s13, 16  ;;  %s4008_s18 = scalar_lea.vmem %s477_s13, 32 }
  0x6e   : > { %p4002_p7 = scmp.ne.s32.totalorder %s477_s13, %s4001_s26  ;;  %p4009_p13 = scmp.lt.s32.totalorder %s477_s13, %s477_s13 }
  0x6f   : > { %p4010_p1 = scmp.lt.s32.totalorder %s4008_s18, %s4001_s26 }
  0x70   : > { %p4004_p8 = pnand %p4002_p7, %p4330_p0 }
  0x71   : > { %p4011_p6 = por %p4010_p1, %p4009_p13 }
  0x72   : > { %p4005_p11 = pneg %p4004_p8 }
  0x74   : > { %p4012_p9 = pnand %p4011_p6, %p4005_p11 }
  0x76   : > { %4015 = shalt.err (!%p4012_p9)
}
  0x77   : > { %3833 = dma.hbm_to_vmem [thread:$0]  (!%p4314_p12), %s5416_s7, 16, %s477_s13, [#allocation6]  }
  0x78   : > { %s4016_s0 = scalar_lea.hbm %s5423_s14, 16 }
  0x79   : > { %p4017_p5 = scmp.ne.s32.totalorder %s5423_s14, %s4016_s0  ;;  %p4023_p3 = scmp.lt.u32.totalorder %s4016_s0, %s5423_s14 }
  0x7b   : > { %p4019_p10 = pnand %p4017_p5, %p4330_p0 }
  0x7d   : > { %p4020_p2 = pneg %p4019_p10 }
  0x7f   : > { %p4025_p4 = pnand %p4023_p3, %p4020_p2 }
  0x81   : > { %4028 = shalt.err (!%p4025_p4)
}
  0x82   : > { %s4029_s24 = scalar_lea.vmem %s514_s1, 16  ;;  %s4036_s13 = scalar_lea.vmem %s514_s1, 32 }
  0x83   : > { %p4030_p7 = scmp.ne.s32.totalorder %s514_s1, %s4029_s24  ;;  %p4037_p13 = scmp.lt.s32.totalorder %s514_s1, %s514_s1 }
  0x84   : > { %p4038_p1 = scmp.lt.s32.totalorder %s4036_s13, %s4029_s24 }
  0x85   : > { %p4032_p8 = pnand %p4030_p7, %p4330_p0 }
  0x86   : > { %p4039_p6 = por %p4038_p1, %p4037_p13 }
  0x87   : > { %p4033_p11 = pneg %p4032_p8 }
  0x89   : > { %p4040_p9 = pnand %p4039_p6, %p4033_p11 }
  0x8b   : > { %4043 = shalt.err (!%p4040_p9)
}
  0x8c   : > { %3839 = dma.hbm_to_vmem [thread:$0]  (!%p4314_p12), %s5423_s14, 16, %s514_s1, [#allocation9]  }
  0x8d   : > { %s4159_s23 = smov [#allocation11]   ;;  %s4044_s0 = scalar_lea.hbm %s5425_s16, 16 }
  0x8e   : > { %s527_s15 = sshll.u32 %s4159_s23, 4  ;;  %p4045_p5 = scmp.ne.s32.totalorder %s5425_s16, %s4044_s0  ;;  %s528_s15 = int_to_ptr.vmem [resolvable:$true] %s527_s15 }
  0x8f   : > { %p4051_p3 = scmp.lt.u32.totalorder %s4044_s0, %s5425_s16 }
  0x90   : > { %p4047_p10 = pnand %p4045_p5, %p4330_p0 }
  0x92   : > { %p4048_p2 = pneg %p4047_p10 }
  0x94   : > { %p4053_p4 = pnand %p4051_p3, %p4048_p2 }
  0x96   : > { %4056 = shalt.err (!%p4053_p4)
}
  0x97   : > { %s4057_s1 = scalar_lea.vmem %s528_s15, 16  ;;  %s4064_s24 = scalar_lea.vmem %s528_s15, 32 }
  0x98   : > { %p4058_p7 = scmp.ne.s32.totalorder %s528_s15, %s4057_s1  ;;  %p4065_p13 = scmp.lt.s32.totalorder %s528_s15, %s528_s15 }
  0x99   : > { %p4066_p1 = scmp.lt.s32.totalorder %s4064_s24, %s4057_s1 }
  0x9a   : > { %p4060_p8 = pnand %p4058_p7, %p4330_p0 }
  0x9b   : > { %p4067_p6 = por %p4066_p1, %p4065_p13 }
  0x9c   : > { %p4061_p11 = pneg %p4060_p8 }
  0x9e   : > { %p4068_p9 = pnand %p4067_p6, %p4061_p11 }
  0xa0   : > { %4071 = shalt.err (!%p4068_p9)
}
  0xa1   : > { %3842 = dma.hbm_to_vmem [thread:$0]  (!%p4314_p12), %s5425_s16, 16, %s528_s15, [#allocation12]  }
  0xa2   : > { %p5461_p5 = scmp.ne.s32.totalorder %s5458_s21, 0 }
  0xa3   : > { %p5462_p10 = scmp.eq.s32.totalorder (!%p5461_p5), %s4276_s28, 0 }
  0xa4   : > { %548 = sbr.rel (%p5461_p5) target bundleno = 2326 (0x916), region = 88 }
  0xab   : > { %4117 = dma.done.wait (%p5462_p10), [#allocation3], 32   ;;  %p5463_p0 = pmov %p5462_p10 }
  0xad   : > { %4119 = vsyncadd (%p5463_p0), [#allocation3], 4294967264  ;;  %p5464_p2 = pmov %p5463_p0 }
  0xae   : > { %p5465_p3 = pmov %p5463_p0 }
  0xaf   : > { %4121 = dma.done.wait (%p5464_p2), [#allocation6], 272  }
  0xb0   : > { %4123 = vsyncadd (%p5465_p3), [#allocation6], 4294967024  ;;  %p5466_p4 = pmov %p5463_p0 }
  0xb1   : > { %p5467_p12 = pmov %p5463_p0 }
  0xb2   : > { %4125 = dma.done.wait (%p5466_p4), [#allocation9], 32  }
  0xb3   : > { %4127 = vsyncadd (%p5467_p12), [#allocation9], 4294967264  ;;  %p5468_p7 = pmov %p5463_p0 }
  0xb4   : > { %p5469_p8 = pmov %p5463_p0 }
  0xb5   : > { %4129 = dma.done.wait (%p5468_p7), [#allocation12], 16  }
  0xb6   : > { %4131 = vsyncadd (%p5469_p8), [#allocation12], 4294967280  ;;  %p619_p11 = scmp.lt.s32.totalorder %s4276_s28, 1  ;;  %v4160_v0 = vmov 0.0   ;;  %vm664_vm0 = vcmask 1043456   ;;  %vm4161_vm1 = vmmov 1  }
  0xb7   : > { %735 = vmatprep.mubr.f32.mxu0 %v4160_v0  ;;  %1333 = vmatprep.mubr.f32.mxu1 %v4160_v0  ;;  %vm4471_vm2 = vmpackc.low %vm664_vm0, %vm4161_vm1  ;;  %s5472_s23 = sld [smem:[#allocation27_spill]]  ;;  %s5473_s0 = sld [smem:[#allocation28_spill]]  ;;  %vm649_vm3 = vcmask 1046528   ;;  %vm657_vm4 = vcmask 228352   ;;  %vm858_vm5 = vcmask 1045504   ;;  %vm976_vm6 = vcmask 1044480  }
  0xb8   : > { %s620_s17 = scalar_select %p619_p11, %s4276_s28, 1  ;;  %vm1256_vm7 = vcmask 187392   ;;  %vm1364_vm8 = vcmask 130048   ;;  %vm4163_vm9 = vmmov 0   ;;  %vm1565_vm10 = vcmask 588800  }
  0xb9   : > { %vm1982_vm11 = vcmask 56320   ;;  %vm2250_vm12 = vcmask 523264   ;;  %s5474_s24 = sld [smem:[#allocation29_spill]]  ;;  %s5476_s26 = sld [smem:[#allocation30_spill]]  ;;  %vm2578_vm13 = vcmask 982016   ;;  %vm2665_vm14 = vcmask 687104  }
  0xba   : > { %s3009_s21 = sshll.u32 %s620_s17, 5  ;;  %s5479_s22 = sld [smem:[#allocation25_spill]]  ;;  %vm2742_vm15 = vcmask 73728  }
  0xbb   : > { %s3006_s19 = sshll.u32 %s4276_s28, 4  ;;  %s5480_s29 = sld [smem:[#allocation31_spill]] }
  0xbc   : > { %s4164_s28 = smov [#allocation13]  }
  0xbd   : > { %s4478_s15 = scalar_lea.vmem %s5472_s23, %s3009_s21  ;;  %v2891_v2 = vld [vmem:[%s5473_s0 + $0x48] sm:$0xff]  ;;  %v2893_v3 = vld [vmem:[%s5473_s0 + $0x58] sm:$0xff]  ;;  %v2890_v4 = vld [vmem:[%s5473_s0 + $0x40] sm:$0xff]  ;;  %s5478_s21 = sld [smem:[#allocation20_spill]] }
  0xbe   : > { %v3474_v5 = vpack.c.bf16 %v2893_v3, %v2891_v2  ;;  %v2892_v6 = vld [vmem:[%s5473_s0 + $0x50] sm:$0xff]  ;;  %v2895_v7 = vld [vmem:[%s5473_s0 + $0x68] sm:$0xff]  ;;  %v2897_v8 = vld [vmem:[%s5473_s0 + $0x78] sm:$0xf]  ;;  %s4076_s25 = sshll.u32 %s4164_s28, 4  ;;  %s4077_s25 = int_to_ptr.vmem [resolvable:$false] %s4076_s25 }
  0xbf   : > { %v3476_v9 = vpack.c.bf16 %v2892_v6, %v2890_v4  ;;  %v3478_v10 = vpack.c.bf16 %v2897_v8, %v2895_v7  ;;  %v2894_v11 = vld [vmem:[%s5473_s0 + $0x60] sm:$0xff]  ;;  %v2896_v12 = vld [vmem:[%s5473_s0 + $0x70] sm:$0xf]  ;;  %v4508_v14 = vld [vmem:[%s4478_s15 + $0x8] sm:$0xff]  ;;  %s5475_s13 = smov %s5474_s24  ;;  %s5477_s17 = smov %s5476_s26 }
  0xc0   : > { %v4505_v13 = vld [vmem:[%s4478_s15] sm:$0xff]  ;;  %3475 = vmatprep.subr.bf16.mxu0 %v3474_v5  ;;  %v629_v15 = vld [vmem:[%s5473_s0 + $0x8] sm:$0xff]  ;;  %v631_v16 = vld [vmem:[%s5473_s0 + $0x18] sm:$0xff]  ;;  %v3481_v17 = vpack.c.bf16 %v2896_v12, %v2894_v11  ;;  %v651_v19 = vrot.slane %v4508_v14, 1  ;;  %v860_v53 = vrot.slane %v4508_v14, 2  ;;  %p5481_p1 = scmp.ne.s32.totalorder %s5479_s22, 0 }
  0xc1   : > { %3477 = vmatpush1.bf16.msra.mxu0 %v3476_v9  ;;  %v650_v18 = vrot.slane %v4505_v13, 1  ;;  %v3484_v20 = vpack.c.bf16 %v631_v16, %v629_v15  ;;  %v628_v21 = vld [vmem:[%s5473_s0] sm:$0xff]  ;;  %v630_v22 = vld [vmem:[%s5473_s0 + $0x10] sm:$0xff]  ;;  %v633_v24 = vld [vmem:[%s5473_s0 + $0x28] sm:$0xff]  ;;  %v859_v52 = vrot.slane %v4505_v13, 2  ;;  %v977_v9 = vrot.slane %v4505_v13, 3  ;;  %s5367_s18 = scalar_lea.hbm %s5480_s29, %s3006_s19 }
  0xc2   : > { %3480 = vmatprep.subr.msk.bf16.mxu0 %vm4471_vm2, %v3478_v10  ;;  %v4527_v23 = vld [vmem:[%s4478_s15 + $0x10] sm:$0xff]  ;;  %v635_v25 = vld [vmem:[%s5473_s0 + $0x38] sm:$0xf]  ;;  %v3486_v27 = vpack.c.bf16 %v630_v22, %v628_v21  ;;  %v632_v31 = vld [vmem:[%s5473_s0 + $0x20] sm:$0xff]  ;;  %v978_v10 = vrot.slane %v4508_v14, 3  ;;  %s4078_s27 = scalar_lea.vmem %s4077_s25, 32 }
  0xc3   : > { %v652_v26 = vsel %vm649_vm3, %v650_v18, %v651_v19  ;;  %v653_v28 = vrot.slane %v4527_v23, 1  ;;  %v4540_v29 = vld [vmem:[%s4478_s15 + $0x18] sm:$0xf]  ;;  %v3488_v30 = vpack.c.bf16 %v635_v25, %v633_v24  ;;  %v634_v32 = vld [vmem:[%s5473_s0 + $0x30] sm:$0xf]  ;;  %v2909_v33 = vld [vmem:[%s5473_s0 + $0x88] sm:$0xff]  ;;  %v861_v58 = vsel %vm858_vm5, %v859_v52, %v860_v53 }
  0xc4   : > { %v2911_v34 = vld [vmem:[%s5473_s0 + $0x98] sm:$0xff]  ;;  %v655_v36 = vrot.slane %v4540_v29, 1  ;;  %v3491_v37 = vpack.c.bf16 %v634_v32, %v632_v31  ;;  %v2908_v40 = vld [vmem:[%s5473_s0 + $0x80] sm:$0xff]  ;;  %v2910_v41 = vld [vmem:[%s5473_s0 + $0x90] sm:$0xff]  ;;  %v862_v60 = vrot.slane %v4527_v23, 2  ;;  %v864_v5 = vrot.slane %v4540_v29, 2 }
  0xc5   : > { %3483 = vmatpush1.bf16.msk.msra.mxu0 %vm4471_vm2, %v3481_v17  ;;  %v654_v35 = vsel %vm649_vm3, %v651_v19, %v653_v28  ;;  %v3494_v38 = vpack.c.bf16 %v2911_v34, %v2909_v33  ;;  %v2913_v42 = vld [vmem:[%s5473_s0 + $0xa8] sm:$0xff]  ;;  %v2915_v43 = vld [vmem:[%s5473_s0 + $0xb8] sm:$0xf]  ;;  %v3496_v44 = vpack.c.bf16 %v2910_v41, %v2908_v40  ;;  %v2912_v46 = vld [vmem:[%s5473_s0 + $0xa0] sm:$0xff]  ;;  %v979_v17 = vsel %vm976_vm6, %v977_v9, %v978_v10  ;;  %s617_s30 = sand.u32 1, %s5478_s21  }
  0xc6   : > { %3485 = vmatprep.subr.bf16.mxu0 %v3484_v20  ;;  %v656_v39 = vsel %vm649_vm3, %v653_v28, %v655_v36  ;;  %v3498_v45 = vpack.c.bf16 %v2915_v43, %v2913_v42  ;;  %v2914_v47 = vld [vmem:[%s5473_s0 + $0xb0] sm:$0xf]  ;;  %v2922_v48 = vld [vmem:[%s5473_s0 + $0xc8] sm:$0xff]  ;;  %v2924_v49 = vld [vmem:[%s5473_s0 + $0xd8] sm:$0xff]  ;;  %v863_v4 = vsel %vm858_vm5, %v860_v53, %v862_v60  ;;  %v865_v8 = vsel %vm858_vm5, %v862_v60, %v864_v5  ;;  %s618_s15 = scalar_lea.vmem [#allocation13], %s617_s30  ;;  %s2745_s21 = scalar_lea.sflag [#allocation4], %s617_s30 }
  0xc7   : > { %v3501_v50 = vpack.c.bf16 %v2914_v47, %v2912_v46  ;;  %v3504_v51 = vpack.c.bf16 %v2924_v49, %v2922_v48  ;;  %v2921_v54 = vld [vmem:[%s5473_s0 + $0xc0] sm:$0xff]  ;;  %v2923_v55 = vld [vmem:[%s5473_s0 + $0xd0] sm:$0xff]  ;;  %v2926_v56 = vld [vmem:[%s5473_s0 + $0xe8] sm:$0xff]  ;;  %v980_v19 = vrot.slane %v4527_v23, 3  ;;  %v982_v25 = vrot.slane %v4540_v29, 3  ;;  %s2757_s1 = sshll.u32 %s618_s15, 4  ;;  %s5369_s1 = int_to_ptr.vmem [resolvable:$true] %s2757_s1 }
  0xc8   : > { %2900 = vmatmul.mubr.msk.f32.vlgmr.msra.gmra.mrb[0].mxu0 %vm657_vm4, %v652_v26  ;;  %v2928_v57 = vld [vmem:[%s5473_s0 + $0xf8] sm:$0xf]  ;;  %v3506_v59 = vpack.c.bf16 %v2923_v55, %v2921_v54  ;;  %v2925_v62 = vld [vmem:[%s5473_s0 + $0xe0] sm:$0xff]  ;;  %v2927_v63 = vld [vmem:[%s5473_s0 + $0xf0] sm:$0xf]  ;;  %v1094_v28 = vrot.slane %v4505_v13, 4  ;;  %p4079_p5 = scmp.lt.s32.totalorder %s5369_s1, %s4077_s25 }
  0xc9   : > { %741 = vmatprep.mubr.f32.mxu0 %v4160_v0  ;;  %3487 = vmatpush1.bf16.msra.mxu0 %v3486_v27  ;;  %v3508_v61 = vpack.c.bf16 %v2928_v57, %v2926_v56  ;;  %v2935_v2 = vld [vmem:[%s5473_s0 + $0x108] sm:$0xff]  ;;  %v2937_v3 = vld [vmem:[%s5473_s0 + $0x118] sm:$0xff]  ;;  %v3511_v6 = vpack.c.bf16 %v2927_v63, %v2925_v62  ;;  %v2934_v11 = vld [vmem:[%s5473_s0 + $0x100] sm:$0xff]  ;;  %v981_v24 = vsel %vm976_vm6, %v978_v10, %v980_v19  ;;  %v1097_v32 = vrot.slane %v4527_v23, 4  ;;  %s4072_s23 = scalar_lea.vmem %s5369_s1, 16 }
  0xca   : > { %3490 = vmatprep.subr.msk.bf16.mxu0 %vm4471_vm2, %v3488_v30  ;;  %v3514_v7 = vpack.c.bf16 %v2937_v3, %v2935_v2  ;;  %v2936_v12 = vld [vmem:[%s5473_s0 + $0x110] sm:$0xff]  ;;  %v2939_v15 = vld [vmem:[%s5473_s0 + $0x128] sm:$0xff]  ;;  %v2941_v16 = vld [vmem:[%s5473_s0 + $0x138] sm:$0xf]  ;;  %v983_v27 = vsel %vm976_vm6, %v980_v19, %v982_v25  ;;  %v1095_v30 = vrot.slane %v4508_v14, 4  ;;  %v1099_v1 = vrot.slane %v4540_v29, 4  ;;  %p4073_p13 = scmp.ne.s32.totalorder %s5369_s1, %s4072_s23  ;;  %p4080_p10 = scmp.lt.s32.totalorder %s4078_s27, %s4072_s23 }
  0xcb   : > { %v3516_v18 = vpack.c.bf16 %v2936_v12, %v2934_v11  ;;  %v3518_v20 = vpack.c.bf16 %v2941_v16, %v2939_v15  ;;  %v2938_v21 = vld [vmem:[%s5473_s0 + $0x120] sm:$0xff]  ;;  %v2940_v22 = vld [vmem:[%s5473_s0 + $0x130] sm:$0xf]  ;;  %v1347_v15 = vld [vmem:[%s5413_s4 + $0x8] sm:$0xff] }
  0xcc   : > { %2901 = vmatmul.mubr.msk.f32.gmra.mrb[2].mxu0 %vm657_vm4, %v654_v35  ;;  %v3521_v26 = vpack.c.bf16 %v2940_v22, %v2938_v21  ;;  %v1096_v31 = vsel %vm664_vm0, %v1094_v28, %v1095_v30  ;;  %v1098_v33 = vsel %vm664_vm0, %v1095_v30, %v1097_v32  ;;  %v1202_v36 = vld [vmem:[#allocation2] sm:$0x3]  ;;  %v1348_v19 = vld [vmem:[%s5413_s4 + $0x10] sm:$0xff]  ;;  %v1255_v21 = vld [vmem:[#allocation5 + $0x8] sm:$0xf]  ;;  %p4074_p6 = pnand %p4073_p13, %p5481_p1  ;;  %p4081_p0 = por %p4080_p10, %p4079_p5 }
  0xcd   : > { %747 = vmatprep.mubr.f32.mxu0 %v4160_v0  ;;  %3493 = vmatpush1.bf16.msk.msra.mxu0 %vm4471_vm2, %v3491_v37  ;;  %v1346_v12 = vld [vmem:[%s5413_s4] sm:$0xff]  ;;  %v1351_v25 = vld [vmem:[%s5413_s4 + $0x28] sm:$0xff]  ;;  %v1353_v28 = vld [vmem:[%s5413_s4 + $0x38] sm:$0xff] }
  0xce   : > { %3495 = vmatprep.subr.bf16.mxu0 %v3494_v38  ;;  %p4075_p9 = pneg %p4074_p6 }
  0xd0   : > { %2902 = vmatmul.mubr.msk.f32.gmra.mrb[4].mxu0 %vm657_vm4, %v656_v39  ;;  %p4082_p2 = pnand %p4081_p0, %p4075_p9 }
  0xd1   : > { %830 = vmatprep.mubr.f32.mxu0 %v4160_v0 }
  0xd4   : > { %2905 = vmatmul.mubr.msk.f32.vlgmr.msra.gmra.mrb[0].mxu0 %vm657_vm4, %v4505_v13  ;;  %v1100_v13 = vsel %vm664_vm0, %v1097_v32, %v1099_v1  ;;  %v1355_v32 = vld [vmem:[%s5413_s4 + $0x48] sm:$0xff]  ;;  %v1356_v1 = vld [vmem:[%s5413_s4 + $0x50] sm:$0xff] }
  0xd5   : > { %836 = vmatprep.mubr.f32.mxu0 %v4160_v0  ;;  %3497 = vmatpush1.bf16.msra.mxu0 %v3496_v44 }
  0xd6   : > { %3500 = vmatprep.subr.msk.bf16.mxu0 %vm4471_vm2, %v3498_v45 }
  0xd8   : > { %2906 = vmatmul.mubr.msk.f32.gmra.mrb[2].mxu0 %vm657_vm4, %v4508_v14  ;;  %v4162_v14 = vmov 0.0|0.0  }
  0xd9   : > { %842 = vmatprep.mubr.f32.mxu0 %v4160_v0  ;;  %3503 = vmatpush1.bf16.msk.msra.mxu0 %vm4471_vm2, %v3501_v50 }
  0xda   : > { %3505 = vmatprep.subr.bf16.mxu0 %v3504_v51 }
  0xdc   : > { %2907 = vmatmul.mubr.msk.f32.gmra.mrb[4].mxu0 %vm657_vm4, %v4527_v23  ;;  %v1204_v23 = vlaneseq }
  0xdd   : > { %942 = vmatprep.mubr.f32.mxu0 %v4160_v0 }
  0xde   : > { %v1205_v34 = vshrl.u32 %v1204_v23, 7 }
  0xe0   : > { %2918 = vmatmul.mubr.msk.f32.vlgmr.msra.gmra.mrb[0].mxu0 %vm657_vm4, %v861_v58  ;;  %v1206_v35 = vsub.s32 0, %v1205_v34  ;;  %v1210_v37 = vsub.s32 1, %v1205_v34  ;;  %v1358_v34 = vld [vmem:[%s5413_s4 + $0x60] sm:$0xff] }
  0xe1   : > { %948 = vmatprep.mubr.f32.mxu0 %v4160_v0  ;;  %3507 = vmatpush1.bf16.msra.mxu0 %v3506_v59 }
  0xe2   : > { %3510 = vmatprep.subr.msk.bf16.mxu0 %vm4471_vm2, %v3508_v61  ;;  %v1207_v38 = vrot.slane %v1202_v36, %v1206_v35  ;;  %v1211_v39 = vrot.slane %v1202_v36, %v1210_v37  ;;  %v1359_v35 = vld [vmem:[%s5413_s4 + $0x68] sm:$0xff]  ;;  %v1360_v37 = vld [vmem:[%s5413_s4 + $0x70] sm:$0xff] }
  0xe3   : > { %v3547_v36 = vpack.c.bf16 %v1359_v35, %v1358_v34  ;;  %v2973_v34 = vld [vmem:[%s5415_s6 + $0xc8] sm:$0xff] }
  0xe4   : > { %2919 = vmatmul.mubr.msk.f32.gmra.mrb[2].mxu0 %vm657_vm4, %v863_v4 }
  0xe5   : > { %954 = vmatprep.mubr.f32.mxu0 %v4160_v0  ;;  %3513 = vmatpush1.bf16.msk.msra.mxu0 %vm4471_vm2, %v3511_v6 }
  0xe6   : > { %3515 = vmatprep.subr.bf16.mxu0 %v3514_v7 }
  0xe8   : > { %2920 = vmatmul.mubr.msk.f32.gmra.mrb[4].mxu0 %vm657_vm4, %v865_v8 }
  0xe9   : > { %1060 = vmatprep.mubr.f32.mxu0 %v4160_v0 }
  0xec   : > { %2931 = vmatmul.mubr.msk.f32.vlgmr.msra.gmra.mrb[0].mxu0 %vm657_vm4, %v979_v17  ;;  %v1254_v17 = vld [vmem:[#allocation5] sm:$0xff] }
  0xed   : > { %1066 = vmatprep.mubr.f32.mxu0 %v4160_v0  ;;  %3517 = vmatpush1.bf16.msra.mxu0 %v3516_v18  ;;  %v3529_v18 = vpack.c.bf16 %v1347_v15, %v1346_v12  ;;  %v2956_v12 = vld [vmem:[%s5415_s6 + $0x50] sm:$0xff] }
  0xee   : > { %3520 = vmatprep.subr.msk.bf16.mxu0 %vm4471_vm2, %v3518_v20  ;;  %v1349_v20 = vld [vmem:[%s5413_s4 + $0x18] sm:$0xff]  ;;  %v2966_v15 = vld [vmem:[%s5415_s6 + $0x90] sm:$0xff] }
  0xef   : > { %v3532_v22 = vpack.c.bf16 %v1349_v20, %v1348_v19  ;;  %v2957_v19 = vld [vmem:[%s5415_s6 + $0x58] sm:$0xff]  ;;  %v2958_v20 = vld [vmem:[%s5415_s6 + $0x60] sm:$0xff] }
  0xf0   : > { %2932 = vmatmul.mubr.msk.f32.gmra.mrb[2].mxu0 %vm657_vm4, %v981_v24  ;;  %v1350_v24 = vld [vmem:[%s5413_s4 + $0x20] sm:$0xff] }
  0xf1   : > { %1072 = vmatprep.mubr.f32.mxu0 %v4160_v0  ;;  %3523 = vmatpush1.bf16.msk.msra.mxu0 %vm4471_vm2, %v3521_v26  ;;  %v3535_v26 = vpack.c.bf16 %v1351_v25, %v1350_v24  ;;  %v2969_v24 = vld [vmem:[%s5415_s6 + $0xa8] sm:$0xff] }
  0xf2   : > { %3582 = vmatprep.subr.bf16.mxu0 %v4162_v14 }
  0xf4   : > { %2933 = vmatmul.mubr.msk.f32.gmra.mrb[4].mxu0 %vm657_vm4, %v983_v27  ;;  %v1352_v27 = vld [vmem:[%s5413_s4 + $0x30] sm:$0xff] }
  0xf5   : > { %1177 = vmatprep.mubr.f32.mxu0 %v4160_v0  ;;  %v3538_v30 = vpack.c.bf16 %v1353_v28, %v1352_v27  ;;  %v2960_v27 = vld [vmem:[%s5415_s6 + $0x70] sm:$0xff] }
  0xf6   : > { %v2970_v28 = vld [vmem:[%s5415_s6 + $0xb0] sm:$0xff] }
  0xf8   : > { %2944 = vmatmul.mubr.msk.f32.vlgmr.msra.gmra.mrb[0].mxu0 %vm657_vm4, %v1096_v31  ;;  %v1354_v31 = vld [vmem:[%s5413_s4 + $0x40] sm:$0xff] }
  0xf9   : > { %1183 = vmatprep.mubr.f32.mxu0 %v4160_v0 }
  0xfc   : > { %2945 = vmatmul.mubr.msk.f32.gmra.mrb[2].mxu0 %vm657_vm4, %v1098_v33  ;;  %v3541_v33 = vpack.c.bf16 %v1355_v32, %v1354_v31  ;;  %v2971_v31 = vld [vmem:[%s5415_s6 + $0xb8] sm:$0xff] }
  0xfd   : > { %1189 = vmatprep.mubr.f32.mxu0 %v4160_v0  ;;  %v3613_v32 = vpack.c.bf16 %v2971_v31, %v2970_v28  ;;  %v2979_v31 = vld [vmem:[%s5415_s6 + $0xf0] sm:$0xff] }
 0x100   : > { %2946 = vmatmul.mubr.msk.f32.gmra.mrb[4].mxu0 %vm657_vm4, %v1100_v13  ;;  %v1357_v13 = vld [vmem:[%s5413_s4 + $0x58] sm:$0xff] }
 0x101   : > { %v3544_v23 = vpack.c.bf16 %v1357_v13, %v1356_v1  ;;  %v2962_v1 = vld [vmem:[%s5415_s6 + $0x80] sm:$0xff]  ;;  %3178 = vmatprep.mubr.msk.f32.mxu0 %vm4163_vm9, %v4160_v0 }
 0x102   : > { %v2972_v13 = vld [vmem:[%s5415_s6 + $0xc0] sm:$0xff] }
 0x103   : > { %v3616_v35 = vpack.c.bf16 %v2973_v34, %v2972_v13  ;;  %v2983_v34 = vld [vmem:[%s5415_s6 + $0x110] sm:$0xff] }
 0x1cb   : > { %v1179_v40 = vpop.f32.mrb[0].mxu0 }
 0x1cc   : > { %v1214_v29 = vadd.f32 %v1207_v38, %v1179_v40  ;;  %v1181_v41 = vpop.f32.mrb[1].mxu0  ;;  %v1362_v40 = vld [vmem:[%s5413_s4 + $0x80] sm:$0xff] }
 0x1cd   : > { %v1215_v42 = vadd.f32 %v1211_v39, %v1181_v41 }
 0x1ce   : > { %v1220_v44 = vmax.f32 %v1214_v29, 0.0  ;;  %v1363_v29 = vld [vmem:[%s5413_s4 + $0x88] sm:$0xff] }
 0x1cf   : > { %v1185_v43 = vpop.f32.mrb[2].mxu0  ;;  %v1221_v47 = vmax.f32 %v1215_v42, 0.0  ;;  %v3553_v41 = vpack.c.bf16 %v1363_v29, %v1362_v40  ;;  %v1446_v42 = vld [vmem:[%s5414_s5] sm:$0xff] }
 0x1d0   : > { %v1216_v45 = vadd.f32 %v1207_v38, %v1185_v43  ;;  %v1187_v46 = vpop.f32.mrb[3].mxu0  ;;  %v1232_v52 = vrot.slane %v1220_v44, 1  ;;  %v1447_v43 = vld [vmem:[%s5414_s5 + $0x8] sm:$0xff] }
 0x1d1   : > { %v1217_v48 = vadd.f32 %v1211_v39, %v1187_v46  ;;  %v1235_v56 = vrot.slane %v1221_v47, 1 }
 0x1d2   : > { %v1222_v49 = vmax.f32 %v1216_v45, 0.0  ;;  %v3556_v45 = vpack.c.bf16 %v1447_v43, %v1446_v42 }
 0x1d3   : > { %v1223_v50 = vmax.f32 %v1217_v48, 0.0  ;;  %v1191_v51 = vpop.f32.mrb[4].mxu0  ;;  %v1449_v48 = vld [vmem:[%s5414_s5 + $0x18] sm:$0xff] }
 0x1d4   : > { %v1233_v53 = vrot.slane %v1222_v49, 1  ;;  %v1218_v54 = vadd.f32 %v1207_v38, %v1191_v51  ;;  %v1193_v55 = vpop.f32.mrb[5].mxu0  ;;  %v1361_v38 = vld [vmem:[%s5413_s4 + $0x78] sm:$0xff] }
 0x1d5   : > { %v1236_v57 = vrot.slane %v1223_v50, 1  ;;  %v1219_v58 = vadd.f32 %v1211_v39, %v1193_v55  ;;  %v3550_v39 = vpack.c.bf16 %v1361_v38, %v1360_v37  ;;  %v1452_v55 = vld [vmem:[%s5414_s5 + $0x30] sm:$0xff] }
 0x1d6   : > { %v1224_v59 = vmax.f32 %v1218_v54, 0.0  ;;  %v1234_v60 = vsel %vm649_vm3, %v1232_v52, %v1233_v53  ;;  %v1450_v52 = vld [vmem:[%s5414_s5 + $0x20] sm:$0xff]  ;;  %v2974_v37 = vld [vmem:[%s5415_s6 + $0xd0] sm:$0xff] }
 0x1d7   : > { %v1225_v61 = vmax.f32 %v1219_v58, 0.0  ;;  %v1237_v62 = vsel %vm649_vm3, %v1235_v56, %v1236_v57  ;;  %v1248_v63 = vmax.f32 %v1220_v44, %v1234_v60  ;;  %v1453_v56 = vld [vmem:[%s5414_s5 + $0x38] sm:$0xff]  ;;  %v1454_v58 = vld [vmem:[%s5414_s5 + $0x40] sm:$0xff] }
 0x1d8   : > { %v1238_v2 = vrot.slane %v1224_v59, 1  ;;  %v1249_v3 = vmax.f32 %v1221_v47, %v1237_v62  ;;  %v1448_v47 = vld [vmem:[%s5414_s5 + $0x10] sm:$0xff]  ;;  %v1457_v62 = vld [vmem:[%s5414_s5 + $0x58] sm:$0xff] }
 0x1d9   : > { %v1240_v4 = vrot.slane %v1225_v61, 1 }
 0x1da   : > { %v1239_v5 = vsel %vm649_vm3, %v1233_v53, %v1238_v2  ;;  %v1252_v16 = vmax.f32 %v1224_v59, %v1238_v2  ;;  %v1451_v53 = vld [vmem:[%s5414_s5 + $0x28] sm:$0xff]  ;;  %v1458_v2 = vld [vmem:[%s5414_s5 + $0x60] sm:$0xff] }
 0x1db   : > { %v1241_v6 = vsel %vm649_vm3, %v1236_v57, %v1240_v4  ;;  %v1250_v7 = vmax.f32 %v1222_v49, %v1239_v5  ;;  %v1253_v11 = vmax.f32 %v1225_v61, %v1240_v4  ;;  %v3562_v54 = vpack.c.bf16 %v1451_v53, %v1450_v52  ;;  %v1455_v59 = vld [vmem:[%s5414_s5 + $0x48] sm:$0xff]  ;;  %v1456_v61 = vld [vmem:[%s5414_s5 + $0x50] sm:$0xff] }
 0x1dc   : > { %v1251_v8 = vmax.f32 %v1223_v50, %v1241_v6  ;;  %v3559_v50 = vpack.c.bf16 %v1449_v48, %v1448_v47  ;;  %v3565_v57 = vpack.c.bf16 %v1453_v56, %v1452_v55  ;;  %v3568_v60 = vpack.c.bf16 %v1455_v59, %v1454_v58  ;;  %v1460_v5 = vld [vmem:[%s5414_s5 + $0x70] sm:$0xff]  ;;  %v1461_v6 = vld [vmem:[%s5414_s5 + $0x78] sm:$0xff]  ;;  %v2987_v47 = vld [vmem:[%s5415_s6 + $0x128] sm:$0xff] }
 0x1dd   : > { %v3526_v9 = vpack.c.bf16 %v1250_v7, %v1248_v63  ;;  %v3571_v63 = vpack.c.bf16 %v1457_v62, %v1456_v61  ;;  %v3577_v7 = vpack.c.bf16 %v1461_v6, %v1460_v5  ;;  %v1543_v61 = vld [vmem:[%s5415_s6 + $0x10] sm:$0xff]  ;;  %v1544_v62 = vld [vmem:[%s5415_s6 + $0x18] sm:$0xff] }
 0x1de   : > { %v3524_v10 = vpack.c.bf16 %v1251_v8, %v1249_v3  ;;  %v1459_v3 = vld [vmem:[%s5414_s5 + $0x68] sm:$0xff]  ;;  %v1462_v8 = vld [vmem:[%s5414_s5 + $0x80] sm:$0xff] }
 0x1df   : > { %v3574_v4 = vpack.c.bf16 %v1459_v3, %v1458_v2  ;;  %v2989_v2 = vld [vmem:[%s5415_s6 + $0x138] sm:$0xff] }
 0x1e0   : > { %3525 = vmatprep.subr.bf16.mxu1 %v3524_v10 }
 0x1e1   : > { %3527 = vmatpush1.bf16.msra.mxu1 %v3526_v9  ;;  %v1463_v9 = vld [vmem:[%s5414_s5 + $0x88] sm:$0xff] }
 0x1e2   : > { %2947 = vmatprep.subr.msk.mxu1 %vm649_vm3, %v1253_v11  ;;  %v3580_v10 = vpack.c.bf16 %v1463_v9, %v1462_v8  ;;  %v2955_v11 = vld [vmem:[%s5415_s6 + $0x48] sm:$0xff]  ;;  %v1545_v9 = vld [vmem:[%s5415_s6 + $0x20] sm:$0xff] }
 0x1e5   : > { %2948 = vmatpush1.msk.msra.mxu1 %vm649_vm3, %v1252_v16  ;;  %v3583_v16 = vpack.c.bf16 %v2956_v12, %v2955_v11  ;;  %v2990_v11 = vld [vmem:[%s5415_s6 + $0x140] sm:$0xff]  ;;  %v2991_v12 = vld [vmem:[%s5415_s6 + $0x148] sm:$0xff] }
 0x1e6   : > { %2949 = vmatmul.mubr.msk.f32.vlgmr.msra.gmra.mrb[0].mxu1 %vm1256_vm7, %v1254_v17  ;;  %3528 = vmatprep.subr.bf16.mxu1 %v4162_v14  ;;  %v2967_v17 = vld [vmem:[%s5415_s6 + $0x98] sm:$0xff] }
 0x1e7   : > { %1339 = vmatprep.mubr.f32.mxu1 %v4160_v0  ;;  %3530 = vmatpush1.bf16.msra.mxu1 %v3529_v18  ;;  %v3607_v18 = vpack.c.bf16 %v2967_v17, %v2966_v15  ;;  %v1547_v17 = vld [vmem:[%s5415_s6 + $0x30] sm:$0xff] }
 0x1e8   : > { %3531 = vmatprep.subr.bf16.mxu1 %v4162_v14  ;;  %3584 = vmatpush3.bf16.msra.mxu0 %v3583_v16  ;;  %v3637_v16 = vpack.c.bf16 %v2991_v12, %v2990_v11  ;;  %v2996_v11 = vld [vmem:[#allocation7] ss:$0 sm:$0xff] }
 0x1e9   : > { %3585 = vmatprep.subr.bf16.mxu0 %v4162_v14 }
 0x1ea   : > { %2950 = vmatmul.mubr.msk.f32.gmra.mrb[2].mxu1 %vm1256_vm7, %v1255_v21  ;;  %v2968_v21 = vld [vmem:[%s5415_s6 + $0xa0] sm:$0xff] }
 0x1eb   : > { %3533 = vmatpush1.bf16.msra.mxu1 %v3532_v22  ;;  %v3586_v22 = vpack.c.bf16 %v2958_v20, %v2957_v19  ;;  %v3610_v25 = vpack.c.bf16 %v2969_v24, %v2968_v21  ;;  %v2992_v19 = vld [vmem:[%s5415_s6 + $0x150] sm:$0xff]  ;;  %v2993_v20 = vld [vmem:[%s5415_s6 + $0x158] sm:$0xff] }
 0x1ec   : > { %3534 = vmatprep.subr.bf16.mxu1 %v4162_v14  ;;  %v2976_v24 = vld [vmem:[%s5415_s6 + $0xd8] sm:$0xff] }
 0x1ed   : > { %3587 = vmatpush3.bf16.msra.mxu0 %v3586_v22  ;;  %v3640_v22 = vpack.c.bf16 %v2993_v20, %v2992_v19 }
 0x1ee   : > { %3588 = vmatprep.subr.bf16.mxu0 %v4162_v14 }
 0x1ef   : > { %3536 = vmatpush1.bf16.msra.mxu1 %v3535_v26  ;;  %v2959_v26 = vld [vmem:[%s5415_s6 + $0x68] sm:$0xff] }
 0x1f0   : > { %3537 = vmatprep.subr.bf16.mxu1 %v4162_v14 }
 0x1f3   : > { %3539 = vmatpush1.bf16.msra.mxu1 %v3538_v30  ;;  %v3589_v30 = vpack.c.bf16 %v2960_v27, %v2959_v26  ;;  %v1549_v26 = vld [vmem:[%s5415_s6 + $0x40] sm:$0xff] }
 0x1f4   : > { %3540 = vmatprep.subr.bf16.mxu1 %v4162_v14  ;;  %v2994_v27 = vld [vmem:[%s5415_s6 + $0x160] sm:$0xff] }
 0x1f5   : > { %3590 = vmatpush3.bf16.msra.mxu0 %v3589_v30  ;;  %v2978_v30 = vld [vmem:[%s5415_s6 + $0xe8] sm:$0xff] }
 0x1f6   : > { %3591 = vmatprep.subr.bf16.mxu0 %v4162_v14 }
 0x1f7   : > { %3542 = vmatpush1.bf16.msra.mxu1 %v3541_v33  ;;  %v2961_v33 = vld [vmem:[%s5415_s6 + $0x78] sm:$0xff] }
 0x1f8   : > { %3543 = vmatprep.subr.bf16.mxu1 %v4162_v14 }
 0x1fb   : > { %3545 = vmatpush1.bf16.msra.mxu1 %v3544_v23  ;;  %v3592_v23 = vpack.c.bf16 %v2962_v1, %v2961_v33  ;;  %v2980_v33 = vld [vmem:[%s5415_s6 + $0xf8] sm:$0xff]  ;;  %v2981_v1 = vld [vmem:[%s5415_s6 + $0x100] sm:$0xff] }
 0x1fc   : > { %3546 = vmatprep.subr.bf16.mxu1 %v4162_v14  ;;  %v3625_v13 = vpack.c.bf16 %v2981_v1, %v2980_v33  ;;  %v2153_v1 = vld [vmem:[%s5419_s10 + $0x40] sm:$0xff] }
 0x1fd   : > { %3593 = vmatpush3.bf16.msra.mxu0 %v3592_v23  ;;  %v2982_v23 = vld [vmem:[%s5415_s6 + $0x108] sm:$0xff] }
 0x1fe   : > { %3176 = vmatprep.subr.mxu0 %v4160_v0 }
 0x1ff   : > { %3548 = vmatpush1.bf16.msra.mxu1 %v3547_v36  ;;  %v2963_v36 = vld [vmem:[%s5415_s6 + $0x88] sm:$0xff] }
 0x200   : > { %3549 = vmatprep.subr.bf16.mxu1 %v4162_v14 }
 0x201   : > { %3177 = vmatpush3.msra.mxu0 %v2963_v36  ;;  %v2984_v36 = vld [vmem:[%s5415_s6 + $0x118] sm:$0xff] }
 0x202   : > { %3594 = vmatprep.subr.bf16.mxu0 %v4162_v14 }
 0x203   : > { %3551 = vmatpush1.bf16.msra.mxu1 %v3550_v39 }
 0x204   : > { %3552 = vmatprep.subr.bf16.mxu1 %v4162_v14 }
 0x207   : > { %3554 = vmatpush1.bf16.msra.mxu1 %v3553_v41 }
 0x208   : > { %3555 = vmatprep.subr.bf16.mxu1 %v4162_v14 }
 0x2b9   : > { %v1335_v44 = vpop.f32.mrb[0].mxu1 }
 0x2ba   : > { %v1337_v46 = vpop.f32.mrb[1].mxu1 }
 0x2bb   : > { %2951 = vmatprep.mubr.msk.f32.mxu1 %vm1364_vm8, %v1337_v46 }
 0x2bc   : > { %1436 = vmatmul.mubr.f32.vlgmr.msra.gmra.mrb[4].mxu1 %v1335_v44 }
 0x2bd   : > { %3557 = vmatpush1.bf16.msra.mxu1 %v3556_v45  ;;  %v1341_v49 = vpop.f32.mrb[2].mxu1  ;;  %v1542_v45 = vld [vmem:[%s5415_s6 + $0x8] sm:$0xff] }
 0x2be   : > { %v1343_v51 = vpop.f32.mrb[3].mxu1  ;;  %3558 = vmatprep.subr.bf16.mxu1 %v4162_v14 }
 0x2bf   : > { %2952 = vmatprep.mubr.msk.f32.mxu1 %vm1364_vm8, %v1343_v51 }
 0x2c0   : > { %1441 = vmatmul.mubr.f32.gmra.mrb[6].mxu1 %v1341_v49 }
 0x2c1   : > { %3560 = vmatpush1.bf16.msra.mxu1 %v3559_v50  ;;  %2953 = vmatprep.mubr.msk.f32.mxu1 %vm1364_vm8, %v1337_v46  ;;  %v2986_v46 = vld [vmem:[%s5415_s6 + $0x120] sm:$0xff] }
 0x2c2   : > { %3561 = vmatprep.subr.bf16.mxu1 %v4162_v14  ;;  %v3631_v52 = vpack.c.bf16 %v2987_v47, %v2986_v46  ;;  %v2066_v46 = vld [vmem:[%s5418_s9 + $0x38] sm:$0xff] }
 0x2c5   : > { %3563 = vmatpush1.bf16.msra.mxu1 %v3562_v54 }
 0x2c6   : > { %3564 = vmatprep.subr.bf16.mxu1 %v4162_v14 }
 0x2c9   : > { %3566 = vmatpush1.bf16.msra.mxu1 %v3565_v57 }
 0x2ca   : > { %3567 = vmatprep.subr.bf16.mxu1 %v4162_v14 }
 0x2cd   : > { %3569 = vmatpush1.bf16.msra.mxu1 %v3568_v60 }
 0x2ce   : > { %3570 = vmatprep.subr.bf16.mxu1 %v4162_v14 }
 0x2d1   : > { %3572 = vmatpush1.bf16.msra.mxu1 %v3571_v63  ;;  %v2988_v63 = vld [vmem:[%s5415_s6 + $0x130] sm:$0xff] }
 0x2d2   : > { %3573 = vmatprep.subr.bf16.mxu1 %v4162_v14  ;;  %v3634_v8 = vpack.c.bf16 %v2989_v2, %v2988_v63 }
 0x2d5   : > { %3575 = vmatpush1.bf16.msra.mxu1 %v3574_v4 }
 0x2d6   : > { %3576 = vmatprep.subr.bf16.mxu1 %v4162_v14 }
 0x2d9   : > { %3578 = vmatpush1.bf16.msra.mxu1 %v3577_v7  ;;  %v3598_v7 = vpack.c.bf16 %v1544_v62, %v1543_v61 }
 0x2da   : > { %3579 = vmatprep.subr.bf16.mxu1 %v4162_v14 }
 0x2dd   : > { %3581 = vmatpush1.bf16.msra.mxu1 %v3580_v10  ;;  %v1546_v10 = vld [vmem:[%s5415_s6 + $0x28] sm:$0xff] }
 0x2de   : > { %3606 = vmatprep.subr.bf16.mxu1 %v4162_v14  ;;  %v3601_v15 = vpack.c.bf16 %v1546_v10, %v1545_v9 }
 0x2e0   : > { %1529 = vmatmul.mubr.f32.vlgmr.msra.gmra.mrb[8].mxu1 %v1335_v44  ;;  %v1541_v44 = vld [vmem:[%s5415_s6] sm:$0xff] }
 0x2e1   : > { %2954 = vmatprep.mubr.msk.f32.mxu1 %vm1364_vm8, %v1343_v51  ;;  %3608 = vmatpush3.bf16.msra.mxu1 %v3607_v18  ;;  %v3595_v51 = vpack.c.bf16 %v1542_v45, %v1541_v44  ;;  %v1548_v18 = vld [vmem:[%s5415_s6 + $0x38] sm:$0xff]  ;;  %v2065_v45 = vld [vmem:[%s5418_s9 + $0x30] sm:$0xff] }
 0x2e2   : > { %3609 = vmatprep.subr.bf16.mxu1 %v4162_v14  ;;  %v3604_v21 = vpack.c.bf16 %v1548_v18, %v1547_v17  ;;  %v3652_v47 = vpack.c.bf16 %v2066_v46, %v2065_v45  ;;  %v2145_v17 = vld [vmem:[%s5419_s10] sm:$0xff]  ;;  %v2146_v18 = vld [vmem:[%s5419_s10 + $0x8] sm:$0xff] }
 0x2e3   : > { %v2241_v45 = vld [vmem:[%s5420_s11 + $0x48] sm:$0xff] }
 0x2e4   : > { %1534 = vmatmul.mubr.f32.gmra.mrb[10].mxu1 %v1341_v49 }
 0x2e5   : > { %3611 = vmatpush3.bf16.msra.mxu1 %v3610_v25  ;;  %3220 = vmatprep.mubr.msk.f32.mxu1 %vm4163_vm9, %v4160_v0  ;;  %v2977_v25 = vld [vmem:[%s5415_s6 + $0xe0] sm:$0xff] }
 0x2e6   : > { %3612 = vmatprep.subr.bf16.mxu1 %v4162_v14  ;;  %v3619_v28 = vpack.c.bf16 %v2977_v25, %v2976_v24  ;;  %v2147_v24 = vld [vmem:[%s5419_s10 + $0x10] sm:$0xff]  ;;  %v2148_v25 = vld [vmem:[%s5419_s10 + $0x18] sm:$0xff] }
 0x2e9   : > { %3614 = vmatpush3.bf16.msra.mxu1 %v3613_v32  ;;  %v3622_v32 = vpack.c.bf16 %v2979_v31, %v2978_v30  ;;  %v2151_v31 = vld [vmem:[%s5419_s10 + $0x30] sm:$0xff] }
 0x2ea   : > { %3615 = vmatprep.subr.bf16.mxu1 %v4162_v14 }
 0x2ed   : > { %3617 = vmatpush3.bf16.msra.mxu1 %v3616_v35  ;;  %v3628_v35 = vpack.c.bf16 %v2983_v34, %v2982_v23  ;;  %v2155_v34 = vld [vmem:[%s5419_s10 + $0x50] sm:$0xff] }
 0x2ee   : > { %3218 = vmatprep.subr.mxu1 %v4160_v0 }
 0x2f1   : > { %3219 = vmatpush3.msra.mxu1 %v2974_v37  ;;  %v2059_v37 = vld [vmem:[%s5418_s9] sm:$0xff] }
 0x2f2   : > { %3630 = vmatprep.subr.bf16.mxu1 %v4162_v14 }
 0x38f   : > { %v1437_v38 = vpop.f32.mrb[4].mxu1 }
 0x390   : > { %v1439_v39 = vpop.f32.mrb[5].mxu1 }
 0x393   : > { %v1442_v40 = vpop.f32.mrb[6].mxu1 }
 0x394   : > { %v1444_v29 = vpop.f32.mrb[7].mxu1 }
 0x395   : > { %v2062_v29 = vld [vmem:[%s5418_s9 + $0x18] sm:$0xff] }
 0x3b3   : > { %v1530_v41 = vpop.f32.mrb[8].mxu1 }
 0x3b4   : > { %v4899_v42 = vmax.f32 %v1437_v38, %v1530_v41  ;;  %v1532_v43 = vpop.f32.mrb[9].mxu1  ;;  %v2060_v38 = vld [vmem:[%s5418_s9 + $0x8] sm:$0xff] }
 0x3b5   : > { %v3643_v39 = vpack.c.bf16 %v2060_v38, %v2059_v37  ;;  %v2064_v43 = vld [vmem:[%s5418_s9 + $0x28] sm:$0xff]  ;;  %v2157_v37 = vld [vmem:[%s5419_s10 + $0x60] sm:$0xff] }
 0x3b6   : > { %v1562_v53 = vrot.slane %v4899_v42, 1  ;;  %v1720_v54 = vrot.slane %v4899_v42, 2  ;;  %v1892_v55 = vrot.slane %v4899_v42, 4  ;;  %v1806_v56 = vrot.slane %v4899_v42, 3  ;;  %v2158_v38 = vld [vmem:[%s5419_s10 + $0x68] sm:$0xff] }
 0x3b7   : > { %v1535_v48 = vpop.f32.mrb[10].mxu1 }
 0x3b8   : > { %v1540_v49 = vmax.f32 %v1442_v40, %v1535_v48  ;;  %v1537_v50 = vpop.f32.mrb[11].mxu1  ;;  %v2061_v40 = vld [vmem:[%s5418_s9 + $0x10] sm:$0xff]  ;;  %v2067_v48 = vld [vmem:[%s5418_s9 + $0x40] sm:$0xff] }
 0x3b9   : > { %v3646_v41 = vpack.c.bf16 %v2062_v29, %v2061_v40  ;;  %v2159_v40 = vld [vmem:[%s5419_s10 + $0x70] sm:$0xff]  ;;  %v2160_v29 = vld [vmem:[%s5419_s10 + $0x78] sm:$0xff] }
 0x3ba   : > { %v1563_v57 = vrot.slane %v1540_v49, 1  ;;  %v1721_v58 = vrot.slane %v1540_v49, 2  ;;  %v1807_v59 = vrot.slane %v1540_v49, 3  ;;  %v1893_v60 = vrot.slane %v1540_v49, 4  ;;  %v2068_v49 = vld [vmem:[%s5418_s9 + $0x48] sm:$0xff] }
 0x3bb   : > { %v3655_v50 = vpack.c.bf16 %v2068_v49, %v2067_v48  ;;  %v2234_v48 = vld [vmem:[%s5420_s11 + $0x10] sm:$0xff]  ;;  %v2235_v49 = vld [vmem:[%s5420_s11 + $0x18] sm:$0xff] }
 0x3bc   : > { %v1564_v3 = vsel %vm649_vm3, %v1562_v53, %v1563_v57  ;;  %v1722_v4 = vsel %vm858_vm5, %v1720_v54, %v1721_v58  ;;  %v1894_v5 = vsel %vm664_vm0, %v1892_v55, %v1893_v60  ;;  %v4933_v6 = vsel %vm976_vm6, %v1806_v56, %v1807_v59  ;;  %v2071_v54 = vld [vmem:[%s5418_s9 + $0x60] sm:$0xff]  ;;  %v2072_v55 = vld [vmem:[%s5418_s9 + $0x68] sm:$0xff]  ;;  %v2073_v57 = vld [vmem:[%s5418_s9 + $0x70] sm:$0xff] }
 0x3bd   : > { %3179 = vmatmul.mubr.msk.f32.vlgmr.msra.gmra.mrb[6].mxu0 %vm1565_vm10, %v1564_v3  ;;  %3221 = vmatmul.mubr.msk.f32.vlgmr.msra.gmra.mrb[12].mxu1 %vm1565_vm10, %v1722_v4  ;;  %v3661_v56 = vpack.c.bf16 %v2072_v55, %v2071_v54  ;;  %v2074_v58 = vld [vmem:[%s5418_s9 + $0x78] sm:$0xff]  ;;  %v3706_v54 = vpack.c.bf16 %v2235_v49, %v2234_v48 }
 0x3be   : > { %3596 = vmatpush3.bf16.msra.mxu0 %v3595_v51  ;;  %3632 = vmatpush3.bf16.msra.mxu1 %v3631_v52  ;;  %v2069_v51 = vld [vmem:[%s5418_s9 + $0x50] sm:$0xff]  ;;  %v2070_v52 = vld [vmem:[%s5418_s9 + $0x58] sm:$0xff]  ;;  %v3664_v59 = vpack.c.bf16 %v2074_v58, %v2073_v57  ;;  %v2237_v57 = vld [vmem:[%s5420_s11 + $0x28] sm:$0xff] }
 0x3bf   : > { %3597 = vmatprep.subr.bf16.mxu0 %v4162_v14  ;;  %3633 = vmatprep.subr.bf16.mxu1 %v4162_v14  ;;  %v3658_v53 = vpack.c.bf16 %v2070_v52, %v2069_v51  ;;  %v2243_v51 = vld [vmem:[%s5420_s11 + $0x58] sm:$0xff]  ;;  %v2244_v58 = vld [vmem:[%s5420_s11 + $0x60] sm:$0xff] }
 0x3c0   : > { %3199 = vmatprep.mubr.msk.f32.mxu0 %vm4163_vm9, %v4160_v0  ;;  %3262 = vmatprep.mubr.msk.f32.mxu1 %vm4163_vm9, %v4160_v0  ;;  %v2569_v48 = vld [vmem:[%s5475_s13 + $0x38] sm:$0xff] }
 0x3c2   : > { %3599 = vmatpush3.bf16.msra.mxu0 %v3598_v7  ;;  %3635 = vmatpush3.bf16.msra.mxu1 %v3634_v8 }
 0x3c3   : > { %3600 = vmatprep.subr.bf16.mxu0 %v4162_v14  ;;  %3636 = vmatprep.subr.bf16.mxu1 %v4162_v14 }
 0x3c6   : > { %3602 = vmatpush3.bf16.msra.mxu0 %v3601_v15  ;;  %3638 = vmatpush3.bf16.msra.mxu1 %v3637_v16 }
 0x3c7   : > { %3603 = vmatprep.subr.bf16.mxu0 %v4162_v14  ;;  %3639 = vmatprep.subr.bf16.mxu1 %v4162_v14 }
 0x3ca   : > { %3605 = vmatpush3.bf16.msra.mxu0 %v3604_v21  ;;  %3641 = vmatpush3.bf16.msra.mxu1 %v3640_v22  ;;  %v1981_v21 = vld [vmem:[%s5417_s8] sm:$0xf]  ;;  %v3667_v22 = vpack.c.bf16 %v2146_v18, %v2145_v17  ;;  %v2479_v18 = vld [vmem:[%s5420_s11 + $0xd0] sm:$0xff] }
 0x3cb   : > { %3197 = vmatprep.subr.mxu0 %v4160_v0  ;;  %3260 = vmatprep.subr.mxu1 %v4160_v0 }
 0x3ce   : > { %3198 = vmatpush3.msra.mxu0 %v1549_v26  ;;  %3261 = vmatpush3.msra.mxu1 %v2994_v27  ;;  %v3670_v26 = vpack.c.bf16 %v2148_v25, %v2147_v24  ;;  %v2149_v27 = vld [vmem:[%s5419_s10 + $0x20] sm:$0xff]  ;;  %v2398_v24 = vld [vmem:[%s5420_s11 + $0x98] sm:$0xff] }
 0x3cf   : > { %3200 = vmatmul.mubr.msk.f32.vlgmr.msra.gmra.mrb[8].mxu0 %vm1565_vm10, %v4899_v42  ;;  %3618 = vmatprep.subr.bf16.mxu0 %v4162_v14  ;;  %v2063_v42 = vld [vmem:[%s5418_s9 + $0x20] sm:$0xff] }
 0x3d0   : > { %3263 = vmatmul.mubr.msk.f32.vlgmr.msra.gmra.mrb[14].mxu1 %vm1565_vm10, %v1894_v5  ;;  %3620 = vmatpush3.bf16.msra.mxu0 %v3619_v28  ;;  %v3649_v44 = vpack.c.bf16 %v2064_v43, %v2063_v42  ;;  %v2150_v28 = vld [vmem:[%s5419_s10 + $0x28] sm:$0xff]  ;;  %v2232_v42 = vld [vmem:[%s5420_s11] sm:$0xff] }
 0x3d1   : > { %3621 = vmatprep.subr.bf16.mxu0 %v4162_v14  ;;  %3241 = vmatprep.mubr.msk.f32.mxu0 %vm4163_vm9, %v4160_v0  ;;  %v3673_v30 = vpack.c.bf16 %v2150_v28, %v2149_v27  ;;  %v2233_v43 = vld [vmem:[%s5420_s11 + $0x8] sm:$0xff] }
 0x3d2   : > { %3265 = vmatprep.subr.mxu1 %v4160_v0  ;;  %3267 = vmatprep.mubr.msk.f32.mxu1 %vm4163_vm9, %v4160_v0  ;;  %v3703_v46 = vpack.c.bf16 %v2233_v43, %v2232_v42  ;;  %v2482_v27 = vld [vmem:[%s5420_s11 + $0xe8] sm:$0xff]  ;;  %v2565_v42 = vld [vmem:[%s5475_s13 + $0x18] sm:$0xff] }
 0x3d4   : > { %3623 = vmatpush3.bf16.msra.mxu0 %v3622_v32  ;;  %v2152_v32 = vld [vmem:[%s5419_s10 + $0x38] sm:$0xff] }
 0x3d5   : > { %3624 = vmatprep.subr.bf16.mxu0 %v4162_v14  ;;  %v3676_v33 = vpack.c.bf16 %v2152_v32, %v2151_v31  ;;  %v2400_v31 = vld [vmem:[%s5420_s11 + $0xa8] sm:$0xff] }
 0x3d8   : > { %3626 = vmatpush3.bf16.msra.mxu0 %v3625_v13  ;;  %v2154_v13 = vld [vmem:[%s5419_s10 + $0x48] sm:$0xff] }
 0x3d9   : > { %3627 = vmatprep.subr.bf16.mxu0 %v4162_v14  ;;  %v3679_v23 = vpack.c.bf16 %v2154_v13, %v2153_v1  ;;  %v2484_v1 = vld [vmem:[%s5420_s11 + $0xf8] sm:$0xff] }
 0x3dc   : > { %3629 = vmatpush3.bf16.msra.mxu0 %v3628_v35  ;;  %v2156_v35 = vld [vmem:[%s5419_s10 + $0x58] sm:$0xff] }
 0x3dd   : > { %3239 = vmatprep.subr.mxu0 %v4160_v0 }
 0x3e0   : > { %3240 = vmatpush3.msra.mxu0 %v2984_v36  ;;  %v3682_v36 = vpack.c.bf16 %v2156_v35, %v2155_v34  ;;  %v2402_v34 = vld [vmem:[%s5420_s11 + $0xb8] sm:$0xff] }
 0x3e1   : > { %3242 = vmatmul.mubr.msk.f32.vlgmr.msra.gmra.mrb[10].mxu0 %vm1565_vm10, %v4933_v6  ;;  %3642 = vmatprep.subr.bf16.mxu0 %v4162_v14 }
 0x3e2   : > { %3302 = vmatprep.mubr.msk.f32.mxu0 %vm4163_vm9, %v4160_v0  ;;  %3644 = vmatpush3.bf16.msra.mxu0 %v3643_v39  ;;  %v3685_v39 = vpack.c.bf16 %v2158_v38, %v2157_v37  ;;  %v2562_v37 = vld [vmem:[%s5474_s24] sm:$0xff]  ;;  %v2563_v38 = vld [vmem:[%s5475_s13 + $0x8] sm:$0xff] }
 0x3e3   : > { %3645 = vmatprep.subr.bf16.mxu0 %v4162_v14 }
 0x3e6   : > { %3647 = vmatpush3.bf16.msra.mxu0 %v3646_v41  ;;  %v3688_v41 = vpack.c.bf16 %v2160_v29, %v2159_v40  ;;  %v3739_v40 = vpack.c.bf16 %v2563_v38, %v2562_v37 }
 0x3e7   : > { %3648 = vmatprep.subr.bf16.mxu0 %v4162_v14 }
 0x3ea   : > { %3650 = vmatpush3.bf16.msra.mxu0 %v3649_v44  ;;  %v2240_v44 = vld [vmem:[%s5420_s11 + $0x40] sm:$0xff] }
 0x3eb   : > { %3651 = vmatprep.subr.bf16.mxu0 %v4162_v14 }
 0x3ee   : > { %3653 = vmatpush3.bf16.msra.mxu0 %v3652_v47  ;;  %v3691_v47 = vpack.c.bf16 %v2241_v45, %v2240_v44  ;;  %v2566_v44 = vld [vmem:[%s5475_s13 + $0x20] sm:$0xff]  ;;  %v2567_v45 = vld [vmem:[%s5475_s13 + $0x28] sm:$0xff] }
 0x3ef   : > { %3654 = vmatprep.subr.bf16.mxu0 %v4162_v14 }
 0x3f2   : > { %3656 = vmatpush3.bf16.msra.mxu0 %v3655_v50  ;;  %v2242_v50 = vld [vmem:[%s5420_s11 + $0x50] sm:$0xff] }
 0x3f3   : > { %3657 = vmatprep.subr.bf16.mxu0 %v4162_v14  ;;  %v3694_v55 = vpack.c.bf16 %v2243_v51, %v2242_v50  ;;  %v2570_v50 = vld [vmem:[%s5475_s13 + $0x40] sm:$0xff]  ;;  %v2571_v51 = vld [vmem:[%s5475_s13 + $0x48] sm:$0xff] }
 0x3f6   : > { %3659 = vmatpush3.bf16.msra.mxu0 %v3658_v53 }
 0x3f7   : > { %3660 = vmatprep.subr.bf16.mxu0 %v4162_v14 }
 0x3fa   : > { %3662 = vmatpush3.bf16.msra.mxu0 %v3661_v56  ;;  %v2236_v56 = vld [vmem:[%s5420_s11 + $0x20] sm:$0xff] }
 0x3fb   : > { %3663 = vmatprep.subr.bf16.mxu0 %v4162_v14 }
 0x3fe   : > { %3665 = vmatpush3.bf16.msra.mxu0 %v3664_v59  ;;  %v2245_v59 = vld [vmem:[%s5420_s11 + $0x68] sm:$0xff] }
 0x3ff   : > { %3690 = vmatprep.subr.bf16.mxu0 %v4162_v14 }
 0x490   : > { %v1634_v60 = vpop.f32.mrb[6].mxu0  ;;  %v1791_v61 = vpop.f32.mrb[12].mxu1 }
 0x491   : > { %v3180_v62 = vpop.f32.mrb[7].mxu0  ;;  %v3222_v63 = vpop.f32.mrb[13].mxu1 }
 0x492   : > { %v2238_v62 = vld [vmem:[%s5420_s11 + $0x30] sm:$0xff]  ;;  %v2239_v63 = vld [vmem:[%s5420_s11 + $0x38] sm:$0xff] }
 0x4a2   : > { %v1706_v2 = vpop.f32.mrb[8].mxu0 }
 0x4a3   : > { %v1707_v3 = vadd.f32 %v1706_v2, %v1634_v60  ;;  %v1963_v4 = vpop.f32.mrb[14].mxu1  ;;  %v3201_v5 = vpop.f32.mrb[9].mxu0  ;;  %v3709_v60 = vpack.c.bf16 %v2237_v57, %v2236_v56  ;;  %v3712_v2 = vpack.c.bf16 %v2239_v63, %v2238_v62  ;;  %v2574_v56 = vld [vmem:[%s5475_s13 + $0x60] sm:$0xff]  ;;  %v2575_v57 = vld [vmem:[%s5475_s13 + $0x68] sm:$0xff]  ;;  %v2655_v62 = vld [vmem:[%s5477_s17 + $0x10] sm:$0xff] }
 0x4a4   : > { %v3264_v6 = vpop.f32.mrb[15].mxu1 }
 0x4a5   : > { %v1795_v7 = vadd.f32 %v1791_v61, %v1707_v3  ;;  %v3697_v61 = vpack.c.bf16 %v2245_v59, %v2244_v58  ;;  %v2246_v3 = vld [vmem:[%s5420_s11 + $0x70] sm:$0xff]  ;;  %v2477_v6 = vld [vmem:[%s5420_s11 + $0xc0] sm:$0xff]  ;;  %v3757_v58 = vpack.c.bf16 %v2575_v57, %v2574_v56 }
 0x4a6   : > { %v2576_v59 = vld [vmem:[%s5475_s13 + $0x70] sm:$0xff] }
 0x4b4   : > { %v1877_v8 = vpop.f32.mrb[10].mxu0 }
 0x4b5   : > { %v1881_v9 = vadd.f32 %v1877_v8, %v1795_v7  ;;  %v3243_v10 = vpop.f32.mrb[11].mxu0  ;;  %v2478_v7 = vld [vmem:[%s5420_s11 + $0xc8] sm:$0xff]  ;;  %v2395_v8 = vld [vmem:[%s5420_s11 + $0x80] sm:$0xff] }
 0x4b7   : > { %v1967_v12 = vadd.f32 %v1963_v4, %v1881_v9  ;;  %v2247_v4 = vld [vmem:[%s5420_s11 + $0x78] sm:$0xff]  ;;  %v2396_v9 = vld [vmem:[%s5420_s11 + $0x88] sm:$0xff] }
 0x4b8   : > { %v3700_v5 = vpack.c.bf16 %v2247_v4, %v2246_v3  ;;  %v2657_v4 = vld [vmem:[%s5477_s17 + $0x20] sm:$0xff] }
 0x4b9   : > { %v1975_v15 = vadd.f32 %v2996_v11, %v1967_v12  ;;  %v3727_v12 = vpack.c.bf16 %v2478_v7, %v2477_v6  ;;  %v2659_v7 = vld [vmem:[%s5477_s17 + $0x30] sm:$0xff] }
 0x4bb   : > { %v1976_v16 = vmax.f32 %v1975_v15, 0.0 }
 0x4bd   : > { %v1978_v19 = vrot.slane %v1976_v16, 1 }
 0x4bf   : > { %v1980_v20 = vmax.f32 %v1976_v16, %v1978_v19  ;;  %v2480_v19 = vld [vmem:[%s5420_s11 + $0xd8] sm:$0xff] }
 0x4c0   : > { %v3730_v25 = vpack.c.bf16 %v2480_v19, %v2479_v18 }
 0x4c1   : > { %3266 = vmatpush3.msk.msra.mxu1 %vm649_vm3, %v1980_v20  ;;  %v3715_v20 = vpack.c.bf16 %v2396_v9, %v2395_v8  ;;  %v2660_v8 = vld [vmem:[%s5477_s17 + $0x38] sm:$0xff] }
 0x4c2   : > { %3268 = vmatmul.mubr.msk.f32.vlgmr.msra.gmra.mrb[16].mxu1 %vm1982_vm11, %v1981_v21  ;;  %3666 = vmatprep.subr.bf16.mxu1 %v4162_v14  ;;  %v3769_v9 = vpack.c.bf16 %v2660_v8, %v2659_v7 }
 0x4c3   : > { %3668 = vmatpush3.bf16.msra.mxu1 %v3667_v22  ;;  %3337 = vmatprep.mubr.msk.f32.mxu1 %vm4163_vm9, %v4160_v0  ;;  %v2397_v22 = vld [vmem:[%s5420_s11 + $0x90] sm:$0xff] }
 0x4c4   : > { %3669 = vmatprep.subr.bf16.mxu1 %v4162_v14  ;;  %v3718_v28 = vpack.c.bf16 %v2398_v24, %v2397_v22  ;;  %v2559_v22 = vld [vmem:[#allocation8] sm:$0x1] }
 0x4c7   : > { %3671 = vmatpush3.bf16.msra.mxu1 %v3670_v26  ;;  %v2481_v26 = vld [vmem:[%s5420_s11 + $0xe0] sm:$0xff] }
 0x4c8   : > { %3672 = vmatprep.subr.bf16.mxu1 %v4162_v14  ;;  %v3733_v32 = vpack.c.bf16 %v2482_v27, %v2481_v26  ;;  %v2662_v27 = vld [vmem:[%s5477_s17 + $0x48] sm:$0xff] }
 0x4cb   : > { %3674 = vmatpush3.bf16.msra.mxu1 %v3673_v30  ;;  %v2399_v30 = vld [vmem:[%s5420_s11 + $0xa0] sm:$0xff] }
 0x4cc   : > { %3675 = vmatprep.subr.bf16.mxu1 %v4162_v14  ;;  %v3721_v13 = vpack.c.bf16 %v2400_v31, %v2399_v30  ;;  %v2663_v30 = vld [vmem:[%s5477_s17 + $0x50] sm:$0xf]  ;;  %v2577_v31 = vld [vmem:[#allocation10] sm:$0x1] }
 0x4cf   : > { %3677 = vmatpush3.bf16.msra.mxu1 %v3676_v33  ;;  %v2483_v33 = vld [vmem:[%s5420_s11 + $0xf0] sm:$0xff] }
 0x4d0   : > { %3678 = vmatprep.subr.bf16.mxu1 %v4162_v14  ;;  %v3736_v35 = vpack.c.bf16 %v2484_v1, %v2483_v33 }
 0x4d3   : > { %3680 = vmatpush3.bf16.msra.mxu1 %v3679_v23  ;;  %v2401_v23 = vld [vmem:[%s5420_s11 + $0xb0] sm:$0xff] }
 0x4d4   : > { %3681 = vmatprep.subr.bf16.mxu1 %v4162_v14 }
 0x4d7   : > { %3683 = vmatpush3.bf16.msra.mxu1 %v3682_v36  ;;  %v3724_v36 = vpack.c.bf16 %v2402_v34, %v2401_v23  ;;  %v2664_v23 = vld [vmem:[#allocation11] sm:$0x1] }
 0x4d8   : > { %3684 = vmatprep.subr.bf16.mxu1 %v4162_v14 }
 0x4db   : > { %3686 = vmatpush3.bf16.msra.mxu1 %v3685_v39 }
 0x4dc   : > { %3687 = vmatprep.subr.bf16.mxu1 %v4162_v14 }
 0x4df   : > { %3689 = vmatpush3.bf16.msra.mxu1 %v3688_v41  ;;  %v2564_v41 = vld [vmem:[%s5475_s13 + $0x10] sm:$0xff] }
 0x4e0   : > { %3702 = vmatprep.subr.bf16.mxu1 %v4162_v14  ;;  %v3742_v43 = vpack.c.bf16 %v2565_v42, %v2564_v41 }
 0x595   : > { %v2055_v52 = vpop.f32.mrb[16].mxu1 }
 0x596   : > { %3303 = vmatmul.mubr.f32.vlgmr.msra.gmra.mrb[12].mxu0 %v2055_v52  ;;  %3338 = vmatmul.mubr.f32.vlgmr.msra.gmra.mrb[18].mxu1 %v2055_v52  ;;  %v3269_v53 = vpop.f32.mrb[17].mxu1  ;;  %v3751_v52 = vpack.c.bf16 %v2571_v51, %v2570_v50 }
 0x597   : > { %3704 = vmatpush3.bf16.msra.mxu1 %v3703_v46  ;;  %3692 = vmatpush3.bf16.msra.mxu0 %v3691_v47  ;;  %v2568_v46 = vld [vmem:[%s5475_s13 + $0x30] sm:$0xff]  ;;  %v3745_v47 = vpack.c.bf16 %v2567_v45, %v2566_v44 }
 0x598   : > { %3705 = vmatprep.subr.bf16.mxu1 %v4162_v14  ;;  %3693 = vmatprep.subr.bf16.mxu0 %v4162_v14  ;;  %v3748_v49 = vpack.c.bf16 %v2569_v48, %v2568_v46  ;;  %v2572_v53 = vld [vmem:[%s5475_s13 + $0x50] sm:$0xff] }
 0x599   : > { %3375 = vmatprep.mubr.msk.f32.mxu1 %vm4163_vm9, %v4160_v0  ;;  %3356 = vmatprep.mubr.msk.f32.mxu0 %vm4163_vm9, %v4160_v0 }
 0x59b   : > { %3707 = vmatpush3.bf16.msra.mxu1 %v3706_v54  ;;  %3695 = vmatpush3.bf16.msra.mxu0 %v3694_v55  ;;  %v2573_v54 = vld [vmem:[%s5475_s13 + $0x58] sm:$0xff] }
 0x59c   : > { %3708 = vmatprep.subr.bf16.mxu1 %v4162_v14  ;;  %3696 = vmatprep.subr.bf16.mxu0 %v4162_v14  ;;  %v3754_v55 = vpack.c.bf16 %v2573_v54, %v2572_v53 }
 0x59f   : > { %3710 = vmatpush3.bf16.msra.mxu1 %v3709_v60  ;;  %3698 = vmatpush3.bf16.msra.mxu0 %v3697_v61  ;;  %v2653_v60 = vld [vmem:[%s5476_s26] sm:$0xff]  ;;  %v2654_v61 = vld [vmem:[%s5477_s17 + $0x8] sm:$0xff] }
 0x5a0   : > { %3711 = vmatprep.subr.bf16.mxu1 %v4162_v14  ;;  %3699 = vmatprep.subr.bf16.mxu0 %v4162_v14  ;;  %v3760_v63 = vpack.c.bf16 %v2654_v61, %v2653_v60 }
 0x5a3   : > { %3713 = vmatpush3.bf16.msra.mxu1 %v3712_v2  ;;  %3701 = vmatpush3.bf16.msra.mxu0 %v3700_v5  ;;  %v2656_v2 = vld [vmem:[%s5477_s17 + $0x18] sm:$0xff]  ;;  %v2658_v5 = vld [vmem:[%s5477_s17 + $0x28] sm:$0xff] }
 0x5a4   : > { %3726 = vmatprep.subr.bf16.mxu1 %v4162_v14  ;;  %3714 = vmatprep.subr.bf16.mxu0 %v4162_v14  ;;  %v3763_v3 = vpack.c.bf16 %v2656_v2, %v2655_v62  ;;  %v3766_v6 = vpack.c.bf16 %v2658_v5, %v2657_v4 }
 0x669   : > { %v2141_v10 = vpop.f32.mrb[12].mxu0  ;;  %v2227_v11 = vpop.f32.mrb[18].mxu1 }
 0x66a   : > { %v2231_v15 = vmax.f32 %v2141_v10, %v2227_v11  ;;  %v3304_v16 = vpop.f32.mrb[13].mxu0  ;;  %v3339_v17 = vpop.f32.mrb[19].mxu1 }
 0x66c   : > { %v2249_v21 = vrot.slane %v2231_v15, 1  ;;  %3376 = vmatmul.mubr.msk.f32.vlgmr.msra.gmra.mrb[20].mxu1 %vm2250_vm12, %v2231_v15  ;;  %v2485_v39 = vrot.slane %v2231_v15, 3  ;;  %v2403_v29 = vrot.slane %v2231_v15, 2 }
 0x66d   : > { %3728 = vmatpush3.bf16.msra.mxu1 %v3727_v12  ;;  %3413 = vmatprep.mubr.msk.f32.mxu1 %vm4163_vm9, %v4160_v0 }
 0x66e   : > { %3357 = vmatmul.mubr.msk.f32.vlgmr.msra.gmra.mrb[14].mxu0 %vm2250_vm12, %v2249_v21  ;;  %3729 = vmatprep.subr.bf16.mxu1 %v4162_v14 }
 0x66f   : > { %3716 = vmatpush3.bf16.msra.mxu0 %v3715_v20  ;;  %3394 = vmatprep.mubr.msk.f32.mxu0 %vm4163_vm9, %v4160_v0 }
 0x670   : > { %3717 = vmatprep.subr.bf16.mxu0 %v4162_v14 }
 0x671   : > { %3731 = vmatpush3.bf16.msra.mxu1 %v3730_v25 }
 0x672   : > { %3732 = vmatprep.subr.bf16.mxu1 %v4162_v14 }
 0x673   : > { %3719 = vmatpush3.bf16.msra.mxu0 %v3718_v28 }
 0x674   : > { %3720 = vmatprep.subr.bf16.mxu0 %v4162_v14 }
 0x675   : > { %3734 = vmatpush3.bf16.msra.mxu1 %v3733_v32 }
 0x676   : > { %3735 = vmatprep.subr.bf16.mxu1 %v4162_v14 }
 0x677   : > { %3722 = vmatpush3.bf16.msra.mxu0 %v3721_v13 }
 0x678   : > { %3723 = vmatprep.subr.bf16.mxu0 %v4162_v14 }
 0x679   : > { %3737 = vmatpush3.bf16.msra.mxu1 %v3736_v35 }
 0x67a   : > { %3759 = vmatprep.subr.bf16.mxu1 %v4162_v14 }
 0x67b   : > { %3725 = vmatpush3.bf16.msra.mxu0 %v3724_v36 }
 0x67c   : > { %3414 = vmatmul.mubr.msk.f32.vlgmr.msra.gmra.mrb[22].mxu1 %vm2250_vm12, %v2485_v39  ;;  %3738 = vmatprep.subr.bf16.mxu0 %v4162_v14 }
 0x67d   : > { %3471 = vmatprep.mubr.msk.f32.mxu1 %vm4163_vm9, %v4160_v0  ;;  %3761 = vmatpush3.bf16.msra.mxu1 %v3760_v63 }
 0x67e   : > { %3395 = vmatmul.mubr.msk.f32.vlgmr.msra.gmra.mrb[16].mxu0 %vm2250_vm12, %v2403_v29  ;;  %3762 = vmatprep.subr.bf16.mxu1 %v4162_v14 }
 0x67f   : > { %3740 = vmatpush3.bf16.msra.mxu0 %v3739_v40  ;;  %3446 = vmatprep.mubr.msk.f32.mxu0 %vm4163_vm9, %v4160_v0 }
 0x680   : > { %3741 = vmatprep.subr.bf16.mxu0 %v4162_v14 }
 0x681   : > { %3764 = vmatpush3.bf16.msra.mxu1 %v3763_v3 }
 0x682   : > { %3765 = vmatprep.subr.bf16.mxu1 %v4162_v14 }
 0x683   : > { %3743 = vmatpush3.bf16.msra.mxu0 %v3742_v43 }
 0x684   : > { %3744 = vmatprep.subr.bf16.mxu0 %v4162_v14 }
 0x685   : > { %3767 = vmatpush3.bf16.msra.mxu1 %v3766_v6 }
 0x686   : > { %3768 = vmatprep.subr.bf16.mxu1 %v4162_v14 }
 0x687   : > { %3746 = vmatpush3.bf16.msra.mxu0 %v3745_v47 }
 0x688   : > { %3747 = vmatprep.subr.bf16.mxu0 %v4162_v14 }
 0x689   : > { %3770 = vmatpush3.bf16.msra.mxu1 %v3769_v9 }
 0x68a   : > { %3771 = vmatprep.subr.bf16.mxu1 %v4162_v14 }
 0x68b   : > { %3749 = vmatpush3.bf16.msra.mxu0 %v3748_v49 }
 0x68c   : > { %3750 = vmatprep.subr.bf16.mxu0 %v4162_v14 }
 0x68f   : > { %3752 = vmatpush3.bf16.msra.mxu0 %v3751_v52 }
 0x690   : > { %3753 = vmatprep.subr.bf16.mxu0 %v4162_v14 }
 0x693   : > { %3755 = vmatpush3.bf16.msra.mxu0 %v3754_v55 }
 0x694   : > { %3756 = vmatprep.subr.bf16.mxu0 %v4162_v14  ;;  %v2661_v14 = vld [vmem:[%s5477_s17 + $0x40] sm:$0xff] }
 0x695   : > { %v3772_v28 = vpack.c.bf16 %v2662_v27, %v2661_v14 }
 0x697   : > { %3758 = vmatpush3.bf16.msra.mxu0 %v3757_v58  ;;  %3773 = vmatpush3.bf16.msra.mxu1 %v3772_v28 }
 0x698   : > { %3444 = vmatprep.subr.mxu0 %v4160_v0  ;;  %3469 = vmatprep.subr.mxu1 %v4160_v0 }
 0x69b   : > { %3445 = vmatpush3.msra.mxu0 %v2576_v59  ;;  %3470 = vmatpush3.msk.msra.mxu1 %vm664_vm0, %v2663_v30 }
 0x73f   : > { %v2391_v10 = vpop.f32.mrb[20].mxu1 }
 0x740   : > { %v3377_v11 = vpop.f32.mrb[21].mxu1 }
 0x741   : > { %v2319_v12 = vpop.f32.mrb[14].mxu0 }
 0x742   : > { %v2392_v15 = vadd.f32 %v2391_v10, %v2319_v12  ;;  %v3358_v16 = vpop.f32.mrb[15].mxu0 }
 0x74f   : > { %v2554_v17 = vpop.f32.mrb[22].mxu1 }
 0x750   : > { %v3415_v18 = vpop.f32.mrb[23].mxu1 }
 0x751   : > { %v2472_v19 = vpop.f32.mrb[16].mxu0 }
 0x752   : > { %v2476_v20 = vadd.f32 %v2472_v19, %v2392_v15  ;;  %v3396_v21 = vpop.f32.mrb[17].mxu0 }
 0x754   : > { %v2558_v24 = vadd.f32 %v2554_v17, %v2476_v20 }
 0x756   : > { %v2560_v25 = vadd.f32 %v2559_v22, %v2558_v24 }
 0x758   : > { %v2561_v26 = vmax.f32 %v2560_v25, 0.0 }
 0x75a   : > { %3447 = vmatmul.mubr.msk.f32.vlgmr.msra.gmra.mrb[18].mxu0 %vm2578_vm13, %v2561_v26 }
 0x82d   : > { %v2648_v32 = vpop.f32.mrb[18].mxu0 }
 0x82e   : > { %v2649_v33 = vadd.f32 %v2648_v32, %v2577_v31  ;;  %v3448_v1 = vpop.f32.mrb[19].mxu0 }
 0x830   : > { %v2652_v13 = vmax.f32 %v2649_v33, 0.0 }
 0x832   : > { %3472 = vmatmul.mubr.msk.f32.vlgmr.msra.gmra.mrb[24].mxu1 %vm2665_vm14, %v2652_v13 }
 0x905   : > { %v2738_v0 = vpop.f32.mrb[24].mxu1 }
 0x906   : > { %v2739_v34 = vadd.f32 %v2738_v0, %v2664_v23  ;;  %v3473_v35 = vpop.f32.mrb[25].mxu1 }
 0x908   : > { %2743 = vst.msk [vmem:[%s618_s15] sm:$0x1] %vm2742_vm15, %v2739_v34 }
 0x909   : > { %4085 = shalt.err (!%p4082_p2)
}
 0x90a   : > { %s4086_s20 = scalar_lea.hbm %s5367_s18, 16  ;;  %s4090_s15 = scalar_lea.hbm %s5480_s29, 32 }
 0x90b   : > { %p4087_p3 = scmp.ne.s32.totalorder %s5367_s18, %s4086_s20  ;;  %p4091_p7 = scmp.lt.u32.totalorder %s5367_s18, %s5480_s29 }
 0x90c   : > { %p4092_p8 = scmp.lt.u32.totalorder %s4090_s15, %s4086_s20  ;;  %p4094_p13 = scmp.lt.u32.totalorder %s4086_s20, %s5367_s18 }
 0x90d   : > { %p4088_p4 = pnand %p4087_p3, %p5481_p1 }
 0x90e   : > { %p4093_p11 = por %p4092_p8, %p4091_p7 }
 0x90f   : > { %p4089_p12 = pneg %p4088_p4 }
 0x910   : > { %p4095_p6 = por %p4094_p13, %p4093_p11 }
 0x912   : > { %p4096_p9 = pnand %p4095_p6, %p4089_p12 }
 0x914   : > { %4099 = shalt.err (!%p4096_p9)
}
 0x915   : > { %3822 = dma.vmem_to_hbm [thread:$0]  (%p5481_p1), %s5369_s1, 16, %s5367_s18, %s2745_s21  }
 0x916 PF: > { %s5482_s23 = sld [smem:[#allocation22_spill]]  ;;  %s5483_s28 = sld [smem:[#allocation19_spill]] }
 0x917   : > { %s5484_s25 = sld [smem:[#allocation26_spill]] }
 0x91c   : > { %p3859_p5 = scmp.ge.s32.totalorder %s5482_s23, 2  ;;  %s2769_s27 = sand.u32 1, %s5483_s28  }
 0x91d   : > { %p5485_p10 = scmp.ne.s32.totalorder %s5484_s25, 0  ;;  %s2770_s30 = scalar_lea.sflag [#allocation4], %s2769_s27 }
 0x91f   : > { %p3844_p0 = pnand %p3859_p5, %p5485_p10 }
 0x921   : > { %4133 = dma.done.wait (!%p3844_p0), %s2770_s30, 16  }
 0x922   : > { %4135 = vsyncadd (!%p3844_p0), %s2770_s30, 4294967280  ;;  %s5486_s27 = sld [smem:[#allocation23_spill]]  ;;  %s5487_s24 = sld [smem:[#allocation20_spill]] }
 0x923   : > { %s5488_s25 = sld [smem:[#allocation21_spill]]  ;;  %s5489_s26 = sld [smem:[#allocation24_spill]] }
 0x928   : > { %p31_p2 = scmp.ge.s32.totalorder %s5486_s27, 4  }
 0x92a   :  { %33 = sbr.rel (!%p31_p2) target bundleno = 13 (0xd), region = 156 }
 0x931   :  { %2774 = vsyncpa [#allocation3], 1 }
 0x932   :  { %2776 = vsyncpa [#allocation3 + $0x1], 1 }
 0x933   :  { %2777 = vsyncpa [#allocation6], 1 }
 0x934   :  { %2778 = vsyncpa [#allocation9], 1 }
 0x935   :  { %2779 = vsyncpa [#allocation12], 1 }
 0x936   :  { %2780 = vsyncpa [#allocation4], 1 }
 0x937   :  { %2782 = vsyncpa [#allocation4 + $0x1], 1 }

</bundles_post_ra>
